<compile_context>
chip_gen: v7x
topology: tpu7x:2x2x1
jax: 0.10.0
libtpu: 0.0.40
codegen_flags: <defaults>
</compile_context>

<pallas_src>
import numpy as np

import jax
import jax.numpy as jnp
from jax import lax
from jax.experimental import pallas as pl
from jax.experimental.pallas import tpu as pltpu


# ----------------------------------------------------------------------------
# Fused Pallas kernel: conv1+ReLU -> (conv2 ⊕ avg-pool) -> Linear/ReLU/Linear
# ----------------------------------------------------------------------------
def _network_fused_kernel(x_ref, r1_ref, b1_ref, r2p_ref, b2_ref,
                          lw1_ref, lb1_ref, lw2_ref, lb2_ref, o_ref):
    # conv1 (Cin->C1, k=3, s=2) as ONE dense MXU matmul against the structured
    # Toeplitz weight matrix, then bias + ReLU.  Columns ordered (ho, wo, c1).
    y1 = jnp.dot(x_ref[...], r1_ref[...],
                 preferred_element_type=jnp.float32) + b1_ref[...]
    y1 = jnp.maximum(y1, 0.0)                                  # (nb, Ho1*Wo1*C1)

    # conv2 (C1->C2, k=3, s=1) has no ReLU (last conv layer) and goes straight
    # into AdaptiveAvgPool2d((1,1)); both are linear, so they are fused into a
    # single structured matrix r2p.  The conv2 bias survives the spatial mean
    # unchanged and is added after the matmul.
    vec = jnp.dot(y1, r2p_ref[...],
                  preferred_element_type=jnp.float32) + b2_ref[...]   # (nb, C2)

    # classifier: Linear(C2 -> lin_width) -> ReLU -> Linear(lin_width -> 1)
    hid = jnp.maximum(
        jnp.dot(vec, lw1_ref[...],
                preferred_element_type=jnp.float32) + lb1_ref[...], 0.0)
    out = jnp.dot(hid, lw2_ref[...],
                  preferred_element_type=jnp.float32) + lb2_ref[...]
    o_ref[...] = out.astype(o_ref.dtype)


# ----------------------------------------------------------------------------
# Wrapper: weight-only restructuring (once) + fused pallas_call
# ----------------------------------------------------------------------------
def network_forward(x_nchw, params, *, block_batch=128):
    """Forward pass of `Network` (classifier branch). Input NCHW, returns (N, 1)."""
    x = x_nchw.astype(jnp.float32)
    n, c_in, h, w = x.shape
    kk = 3                                   # cnn_kernel
    assert h >= kk and w >= kk
    ho1 = (h - kk) // 2 + 1                  # conv1 output height (stride 2)
    wo1 = (w - kk) // 2 + 1                  # conv1 output width  (stride 2)
    ho2 = ho1 - (kk - 1)                     # conv2 output height (stride 1)
    wo2 = wo1 - (kk - 1)                     # conv2 output width  (stride 1)
    c1 = params["w1"].shape[-1]              # cnn_width   (8)
    c2 = params["w2"].shape[-1]              # cnn_outdim  (32)
    lin_w = params["lw1"].shape[-1]          # lin_width   (16)

    # ---- weight-only restructuring (independent of batch / image data) ------
    # Selection tensors encode the stride-2 conv1 footprint along H and W.
    sH = np.zeros((kk, h, ho1), np.float32)
    sW = np.zeros((kk, w, wo1), np.float32)
    for kj in range(kk):
        for o in range(ho1):
            sH[kj, 2 * o + kj, o] = 1.0
        for o in range(wo1):
            sW[kj, 2 * o + kj, o] = 1.0
    # R1[(c,hi,wi), (ho,wo,co)] = w1[hi-2ho, wi-2wo, c, co]  (0 where invalid)
    r1 = jnp.einsum("aip,bjq,abcd->cijpqd",
                    jnp.asarray(sH), jnp.asarray(sW), params["w1"])
    r1 = r1.reshape(c_in * h * w, ho1 * wo1 * c1)
    b1r = jnp.tile(params["b1"], ho1 * wo1).reshape(1, ho1 * wo1 * c1)

    # conv2 (stride 1) fused with the (1,1) adaptive average pool:
    # R2P[(hi,wi,c), co] = (1/(Ho2*Wo2)) * sum_{valid (ho,wo)} w2[hi-ho, wi-wo, c, co]
    tH = np.zeros((kk, ho1, ho2), np.float32)
    tW = np.zeros((kk, wo1, wo2), np.float32)
    for kj in range(kk):
        for o in range(ho2):
            tH[kj, o + kj, o] = 1.0
        for o in range(wo2):
            tW[kj, o + kj, o] = 1.0
    r2p = jnp.einsum("aip,bjq,abcd->ijcd",
                     jnp.asarray(tH), jnp.asarray(tW), params["w2"])
    r2p = (r2p / float(ho2 * wo2)).reshape(ho1 * wo1 * c1, c2)
    b2r = params["b2"].reshape(1, c2)

    lw1 = params["lw1"]
    lb1 = params["lb1"].reshape(1, -1)
    lw2 = params["lw2"]
    lb2 = params["lb2"].reshape(1, -1)

    # ---- layout plumbing: flatten NCHW -> (N, C*H*W) (lane-dense input) -----
    x2 = x.reshape(n, c_in * h * w)

    # Batch tiling: one grid step per batch tile (parallel axis -> megacore).
    nb = n if n < block_batch else block_batch
    n_pad = ((n + nb - 1) // nb) * nb
    if n_pad != n:
        x2 = jnp.pad(x2, ((0, n_pad - n), (0, 0)))
    grid = (n_pad // nb,)

    def _full(arr):                 # full-array block, resident across steps
        return pl.BlockSpec(arr.shape, lambda i: (0, 0))

    flops_per_img = (2 * (c_in * h * w) * (ho1 * wo1 * c1)
                     + 2 * (ho1 * wo1 * c1) * c2
                     + 2 * c2 * lin_w + 2 * lin_w)
    weight_bytes = 4 * (r1.size + b1r.size + r2p.size + b2r.size
                        + lw1.size + lb1.size + lw2.size + lb2.size)
    cost = pl.CostEstimate(
        flops=int(n_pad * flops_per_img),
        transcendentals=0,
        bytes_accessed=int(4 * x2.size + weight_bytes + 4 * n_pad),
    )

    out = pl.pallas_call(
        _network_fused_kernel,
        out_shape=jax.ShapeDtypeStruct((n_pad, 1), jnp.float32),
        grid=grid,
        in_specs=[
            pl.BlockSpec((nb, c_in * h * w), lambda i: (i, 0)),
            _full(r1), _full(b1r),
            _full(r2p), _full(b2r),
            _full(lw1), _full(lb1),
            _full(lw2), _full(lb2),
        ],
        out_specs=pl.BlockSpec((nb, 1), lambda i: (i, 0)),
        compiler_params=pltpu.CompilerParams(dimension_semantics=("parallel",)),
        cost_estimate=cost,
    )(x2, r1, b1r, r2p, b2r, lw1, lb1, lw2, lb2)

    return out[:n]


# ----------------------------------------------------------------------------
# Pure-JAX reference (for validation)
# ----------------------------------------------------------------------------
def reference_forward(x_nchw, params):
    x = jnp.transpose(x_nchw, (0, 2, 3, 1)).astype(jnp.float32)
    dn = ("NHWC", "HWIO", "NHWC")
    y = lax.conv_general_dilated(x, params["w1"], (2, 2), "VALID", dimension_numbers=dn)
    y = jax.nn.relu(y + params["b1"])
    y = lax.conv_general_dilated(y, params["w2"], (1, 1), "VALID", dimension_numbers=dn)
    y = y + params["b2"]
    vec = jnp.mean(y, axis=(1, 2))
    hid = jax.nn.relu(vec @ params["lw1"] + params["lb1"])
    return hid @ params["lw2"] + params["lb2"]


# ----------------------------------------------------------------------------
# Deterministic parameter init
# ----------------------------------------------------------------------------
def init_params(key, starting_channels=4, cnn_width=8, cnn_outdim=32, lin_width=16):
    ks = jax.random.split(key, 8)
    scale = 0.1
    return {
        # conv weights stored in HWIO (kh, kw, Cin, Cout)
        "w1": scale * jax.random.normal(ks[0], (3, 3, starting_channels, cnn_width), jnp.float32),
        "b1": scale * jax.random.normal(ks[1], (cnn_width,), jnp.float32),
        "w2": scale * jax.random.normal(ks[2], (3, 3, cnn_width, cnn_outdim), jnp.float32),
        "b2": scale * jax.random.normal(ks[3], (cnn_outdim,), jnp.float32),
        # linear weights stored as (in, out)
        "lw1": scale * jax.random.normal(ks[4], (cnn_outdim, lin_width), jnp.float32),
        "lb1": scale * jax.random.normal(ks[5], (lin_width,), jnp.float32),
        "lw2": scale * jax.random.normal(ks[6], (lin_width, 1), jnp.float32),
        "lb2": scale * jax.random.normal(ks[7], (1,), jnp.float32),
    }


if __name__ == "__main__":
    key = jax.random.PRNGKey(0)
    k_x, k_p = jax.random.split(key)

    # Small shapes consistent with the module: batch=2, starting_channels=4, 16x16 images.
    x = jax.random.normal(k_x, (2, 4, 16, 16), jnp.float32)   # NCHW like PyTorch
    params = init_params(k_p)

    out = jax.jit(network_forward)(x, params)
    out = jax.block_until_ready(out)

    ref = reference_forward(x, params)
    assert out.shape == (2, 1), out.shape
    assert jnp.allclose(out, ref, rtol=1e-3, atol=1e-3), (out, ref)

    print("KERNEL_OK")
</pallas_src>

<mosaic_0001>
module attributes {stable_mosaic.version = 11 : i64} {
  func.func @_network_fused_kernel(%arg0: i32, %arg1: memref<2x1024xf32, #tpu.memory_space<vmem>>, %arg2: memref<1024x392xf32, #tpu.memory_space<vmem>>, %arg3: memref<1x392xf32, #tpu.memory_space<vmem>>, %arg4: memref<392x32xf32, #tpu.memory_space<vmem>>, %arg5: memref<1x32xf32, #tpu.memory_space<vmem>>, %arg6: memref<32x16xf32, #tpu.memory_space<vmem>>, %arg7: memref<1x16xf32, #tpu.memory_space<vmem>>, %arg8: memref<16x1xf32, #tpu.memory_space<vmem>>, %arg9: memref<1x1xf32, #tpu.memory_space<vmem>>, %arg10: memref<2x1xf32, #tpu.memory_space<vmem>>) attributes {dimension_semantics = [#tpu.dimension_semantics<parallel>], iteration_bounds = array<i64: 1>, scalar_prefetch = 0 : i64, scratch_operands = 0 : i64, tpu.core_type = #tpu.core_type<tc>, window_params = [{transform_indices = @transform_0, window_bounds = array<i64: 2, 1024>}, {pipeline_mode = #tpu.pipeline_mode<synchronous>, transform_indices = @transform_1, window_bounds = array<i64: 1024, 392>}, {pipeline_mode = #tpu.pipeline_mode<synchronous>, transform_indices = @transform_2, window_bounds = array<i64: 1, 392>}, {pipeline_mode = #tpu.pipeline_mode<synchronous>, transform_indices = @transform_3, window_bounds = array<i64: 392, 32>}, {pipeline_mode = #tpu.pipeline_mode<synchronous>, transform_indices = @transform_4, window_bounds = array<i64: 1, 32>}, {pipeline_mode = #tpu.pipeline_mode<synchronous>, transform_indices = @transform_5, window_bounds = array<i64: 32, 16>}, {pipeline_mode = #tpu.pipeline_mode<synchronous>, transform_indices = @transform_6, window_bounds = array<i64: 1, 16>}, {pipeline_mode = #tpu.pipeline_mode<synchronous>, transform_indices = @transform_7, window_bounds = array<i64: 16, 1>}, {pipeline_mode = #tpu.pipeline_mode<synchronous>, transform_indices = @transform_8, window_bounds = array<i64: 1, 1>}, {transform_indices = @transform_9, window_bounds = array<i64: 2, 1>}]} {
    %c0 = arith.constant 0 : index
    %c0_0 = arith.constant 0 : index
    %0 = vector.load %arg1[%c0, %c0_0] : memref<2x1024xf32, #tpu.memory_space<vmem>>, vector<2x1024xf32>
    %c0_1 = arith.constant 0 : index
    %c0_2 = arith.constant 0 : index
    %1 = vector.load %arg2[%c0_1, %c0_2] : memref<1024x392xf32, #tpu.memory_space<vmem>>, vector<1024x392xf32>
    %cst = arith.constant dense<0.000000e+00> : vector<2x392xf32>
    %2 = tpu.matmul %0, %1, %cst {dimension_numbers = #tpu.dot_dimension_numbers<[1], [0], [0], [1], [0, 0, 1, 1], [], []>} : vector<2x1024xf32>, vector<1024x392xf32>, vector<2x392xf32> -> vector<2x392xf32>
    %c0_3 = arith.constant 0 : index
    %c0_4 = arith.constant 0 : index
    %3 = vector.load %arg3[%c0_3, %c0_4] : memref<1x392xf32, #tpu.memory_space<vmem>>, vector<1x392xf32>
    %4 = vector.broadcast %3 : vector<1x392xf32> to vector<2x392xf32>
    %5 = arith.addf %2, %4 : vector<2x392xf32>
    %cst_5 = arith.constant 0.000000e+00 : f32
    %6 = vector.broadcast %cst_5 : f32 to vector<2x392xf32>
    %7 = arith.maximumf %5, %6 : vector<2x392xf32>
    %c0_6 = arith.constant 0 : index
    %c0_7 = arith.constant 0 : index
    %8 = vector.load %arg4[%c0_6, %c0_7] : memref<392x32xf32, #tpu.memory_space<vmem>>, vector<392x32xf32>
    %cst_8 = arith.constant dense<0.000000e+00> : vector<2x32xf32>
    %9 = tpu.matmul %7, %8, %cst_8 {dimension_numbers = #tpu.dot_dimension_numbers<[1], [0], [0], [1], [0, 0, 1, 1], [], []>} : vector<2x392xf32>, vector<392x32xf32>, vector<2x32xf32> -> vector<2x32xf32>
    %c0_9 = arith.constant 0 : index
    %c0_10 = arith.constant 0 : index
    %10 = vector.load %arg5[%c0_9, %c0_10] : memref<1x32xf32, #tpu.memory_space<vmem>>, vector<1x32xf32>
    %11 = vector.broadcast %10 : vector<1x32xf32> to vector<2x32xf32>
    %12 = arith.addf %9, %11 : vector<2x32xf32>
    %c0_11 = arith.constant 0 : index
    %c0_12 = arith.constant 0 : index
    %13 = vector.load %arg6[%c0_11, %c0_12] : memref<32x16xf32, #tpu.memory_space<vmem>>, vector<32x16xf32>
    %cst_13 = arith.constant dense<0.000000e+00> : vector<2x16xf32>
    %14 = tpu.matmul %12, %13, %cst_13 {dimension_numbers = #tpu.dot_dimension_numbers<[1], [0], [0], [1], [0, 0, 1, 1], [], []>} : vector<2x32xf32>, vector<32x16xf32>, vector<2x16xf32> -> vector<2x16xf32>
    %c0_14 = arith.constant 0 : index
    %c0_15 = arith.constant 0 : index
    %15 = vector.load %arg7[%c0_14, %c0_15] : memref<1x16xf32, #tpu.memory_space<vmem>>, vector<1x16xf32>
    %16 = vector.broadcast %15 : vector<1x16xf32> to vector<2x16xf32>
    %17 = arith.addf %14, %16 : vector<2x16xf32>
    %cst_16 = arith.constant 0.000000e+00 : f32
    %18 = vector.broadcast %cst_16 : f32 to vector<2x16xf32>
    %19 = arith.maximumf %17, %18 : vector<2x16xf32>
    %c0_17 = arith.constant 0 : index
    %c0_18 = arith.constant 0 : index
    %20 = vector.load %arg8[%c0_17, %c0_18] : memref<16x1xf32, #tpu.memory_space<vmem>>, vector<16x1xf32>
    %cst_19 = arith.constant dense<0.000000e+00> : vector<2x1xf32>
    %21 = tpu.matmul %19, %20, %cst_19 {dimension_numbers = #tpu.dot_dimension_numbers<[1], [0], [0], [1], [0, 0, 1, 1], [], []>} : vector<2x16xf32>, vector<16x1xf32>, vector<2x1xf32> -> vector<2x1xf32>
    %c0_20 = arith.constant 0 : index
    %c0_21 = arith.constant 0 : index
    %22 = vector.load %arg9[%c0_20, %c0_21] : memref<1x1xf32, #tpu.memory_space<vmem>>, vector<1x1xf32>
    %23 = vector.broadcast %22 : vector<1x1xf32> to vector<2x1xf32>
    %24 = arith.addf %21, %23 : vector<2x1xf32>
    %c0_22 = arith.constant 0 : index
    %c0_23 = arith.constant 0 : index
    %25 = vector.load %arg10[%c0_22, %c0_23] : memref<2x1xf32, #tpu.memory_space<vmem>>, vector<2x1xf32>
    tpu.vector_store %arg10[%c0_22, %c0_23], %24 {strides = array<i32>} : memref<2x1xf32, #tpu.memory_space<vmem>>, vector<2x1xf32>,
    return
  }
  func.func @transform_0(%arg0: i32) -> (i32, i32) {
    %c0_i32 = arith.constant 0 : i32
    %c0_i32_0 = arith.constant 0 : i32
    return %arg0, %c0_i32 : i32, i32
  }
  func.func @transform_1(%arg0: i32) -> (i32, i32) {
    %c0_i32 = arith.constant 0 : i32
    %c0_i32_0 = arith.constant 0 : i32
    %c0_i32_1 = arith.constant 0 : i32
    return %c0_i32, %c0_i32_0 : i32, i32
  }
  func.func @transform_2(%arg0: i32) -> (i32, i32) {
    %c0_i32 = arith.constant 0 : i32
    %c0_i32_0 = arith.constant 0 : i32
    %c0_i32_1 = arith.constant 0 : i32
    return %c0_i32, %c0_i32_0 : i32, i32
  }
  func.func @transform_3(%arg0: i32) -> (i32, i32) {
    %c0_i32 = arith.constant 0 : i32
    %c0_i32_0 = arith.constant 0 : i32
    %c0_i32_1 = arith.constant 0 : i32
    return %c0_i32, %c0_i32_0 : i32, i32
  }
  func.func @transform_4(%arg0: i32) -> (i32, i32) {
    %c0_i32 = arith.constant 0 : i32
    %c0_i32_0 = arith.constant 0 : i32
    %c0_i32_1 = arith.constant 0 : i32
    return %c0_i32, %c0_i32_0 : i32, i32
  }
  func.func @transform_5(%arg0: i32) -> (i32, i32) {
    %c0_i32 = arith.constant 0 : i32
    %c0_i32_0 = arith.constant 0 : i32
    %c0_i32_1 = arith.constant 0 : i32
    return %c0_i32, %c0_i32_0 : i32, i32
  }
  func.func @transform_6(%arg0: i32) -> (i32, i32) {
    %c0_i32 = arith.constant 0 : i32
    %c0_i32_0 = arith.constant 0 : i32
    %c0_i32_1 = arith.constant 0 : i32
    return %c0_i32, %c0_i32_0 : i32, i32
  }
  func.func @transform_7(%arg0: i32) -> (i32, i32) {
    %c0_i32 = arith.constant 0 : i32
    %c0_i32_0 = arith.constant 0 : i32
    %c0_i32_1 = arith.constant 0 : i32
    return %c0_i32, %c0_i32_0 : i32, i32
  }
  func.func @transform_8(%arg0: i32) -> (i32, i32) {
    %c0_i32 = arith.constant 0 : i32
    %c0_i32_0 = arith.constant 0 : i32
    %c0_i32_1 = arith.constant 0 : i32
    return %c0_i32, %c0_i32_0 : i32, i32
  }
  func.func @transform_9(%arg0: i32) -> (i32, i32) {
    %c0_i32 = arith.constant 0 : i32
    %c0_i32_0 = arith.constant 0 : i32
    return %arg0, %c0_i32 : i32, i32
  }
}

</mosaic_0001>

<bundles_post_ra>
// kernel: tile.8
= control target key start
LH: loop header
LB: loop body
LE: loop exit
PB: predicated region body
PF: predicated region fallthrough
CT: control target
= control target key end

     0   :  { %s58_s0 = inlined_call_operand.vmem [shape: f32[8], index: 0, kind: input, shape index: {}]   ;;  %s59_s1 = inlined_call_operand.vmem [shape: f32[49,8], index: 1, kind: output, shape index: {}]  }
   0x1   :  { %v4_v0 = vld [vmem:[%s58_s0] ss:$0 sm:$0xff] }
   0x2   :  { %5 = vst [vmem:[%s59_s1] sm:$0xff] %v4_v0  ;;  %18 = vst [vmem:[%s59_s1 + $0x8] sm:$0xff] %v4_v0 }
   0x3   :  { %19 = vst [vmem:[%s59_s1 + $0x10] sm:$0xff] %v4_v0  ;;  %20 = vst [vmem:[%s59_s1 + $0x18] sm:$0xff] %v4_v0 }
   0x4   :  { %21 = vst [vmem:[%s59_s1 + $0x20] sm:$0xff] %v4_v0  ;;  %22 = vst [vmem:[%s59_s1 + $0x28] sm:$0xff] %v4_v0 }
   0x5   :  { %23 = vst [vmem:[%s59_s1 + $0x30] sm:$0xff] %v4_v0 }

// kernel: tile.9
= control target key start
LH: loop header
LB: loop body
LE: loop exit
PB: predicated region body
PF: predicated region fallthrough
CT: control target
= control target key end

     0   :  { %s11_s6 = smov 3  ;;  %vm15_vm0 = vcmask 1042434   ;;  %s33_s11 = smov 3  ;;  %vm6_vm1 = vcmask 1043458   ;;  %vm8_vm2 = vcmask 64512   ;;  %vm19_vm3 = vcmask 1048512   ;;  %s396_s0 = inlined_call_operand.vmem [shape: f32[49,8], index: 0, kind: input, shape index: {}]   ;;  %s397_s1 = inlined_call_operand.vmem [shape: f32[1,392], index: 1, kind: output, shape index: {}]  }
   0x1   :  { %v201_v0 = vld [vmem:[%s396_s0 + $0x2d] sm:$0x4]   ;;  %v205_v2 = vld [vmem:[%s396_s0 + $0x2b] sm:$0x4]   ;;  %s22_s16 = smov 3  ;;  %s248_s19 = smov 120  }
   0x2   :  { %v200_v1 = vld [vmem:[%s396_s0 + $0xf] ss:$16 sm:%s11_s6]   ;;  %v204_v4 = vld [vmem:[%s396_s0 + $0xd] ss:$16 sm:%s33_s11]   ;;  %s44_s22 = smov 3  ;;  %s249_s25 = smov 104  }
   0x3   :  { %v16_v3 = vsel %vm15_vm0, %v201_v0, %v200_v1  ;;  %v203_v5 = vld [vmem:[%s396_s0 + $0x2c] sm:$0x4]   ;;  %v38_v6 = vsel %vm15_vm0, %v205_v2, %v204_v4  ;;  %v207_v8 = vld [vmem:[%s396_s0 + $0x2a] sm:$0x4]   ;;  %s55_s28 = smov 3  ;;  %s66_s4 = smov 3 }
   0x4   :  { %17 = vrot.lane.b32.xlu0 %v16_v3, %s248_s19  ;;  %v202_v7 = vld [vmem:[%s396_s0 + $0xe] ss:$16 sm:%s22_s16]   ;;  %39 = vrot.lane.b32.xlu1 %v38_v6, %s249_s25  ;;  %s77_s9 = smov 3  ;;  %s250_s10 = smov 112   ;;  %vm30_vm4 = vcmask 982912   ;;  %vm41_vm5 = vcmask 917312  }
   0x5   :  { %v27_v9 = vsel %vm15_vm0, %v203_v5, %v202_v7  ;;  %v206_v10 = vld [vmem:[%s396_s0 + $0xc] ss:$16 sm:%s44_s22]   ;;  %v208_v12 = vld [vmem:[%s396_s0 + $0xb] ss:$16 sm:%s55_s28]   ;;  %s88_s11 = smov 3  ;;  %s251_s12 = smov 96  }
   0x6   :  { %v49_v11 = vsel %vm15_vm0, %v207_v8, %v206_v10  ;;  %v209_v13 = vld [vmem:[%s396_s0 + $0x29] sm:$0x4]   ;;  %v210_v14 = vld [vmem:[%s396_s0 + $0xa] ss:$16 sm:%s66_s4]   ;;  %v213_v19 = vld [vmem:[%s396_s0 + $0x27] sm:$0x4]  }
   0x7   :  { %v211_v15 = vld [vmem:[%s396_s0 + $0x28] sm:$0x4]   ;;  %v60_v16 = vsel %vm15_vm0, %v209_v13, %v208_v12  ;;  %v212_v18 = vld [vmem:[%s396_s0 + $0x9] ss:$16 sm:%s77_s9]   ;;  %v215_v21 = vld [vmem:[%s396_s0 + $0x26] sm:$0x4]  }
   0x8   :  { %28 = vrot.lane.b32.xlu0 %v27_v9, %s250_s10  ;;  %50 = vrot.lane.b32.xlu1 %v49_v11, %s251_s12  ;;  %v71_v17 = vsel %vm15_vm0, %v211_v15, %v210_v14  ;;  %v214_v20 = vld [vmem:[%s396_s0 + $0x8] ss:$16 sm:%s88_s11]   ;;  %s99_s21 = smov 3  ;;  %s252_s22 = smov 88   ;;  %v82_v22 = vsel %vm15_vm0, %v213_v19, %v212_v18  ;;  %vm52_vm6 = vcmask 851712   ;;  %vm63_vm7 = vcmask 786112  }
   0x9   :  { %s110_s23 = smov 3  ;;  %s253_s24 = smov 80   ;;  %v93_v23 = vsel %vm15_vm0, %v215_v21, %v214_v20  ;;  %v216_v24 = vld [vmem:[%s396_s0 + $0x7] ss:$16 sm:%s99_s21]   ;;  %v219_v27 = vld [vmem:[%s396_s0 + $0x24] sm:$0x4]  }
   0xa   :  { %v217_v25 = vld [vmem:[%s396_s0 + $0x25] sm:$0x4]   ;;  %v218_v26 = vld [vmem:[%s396_s0 + $0x6] ss:$16 sm:%s110_s23]   ;;  %s121_s4 = smov 3  ;;  %s132_s5 = smov 3 }
   0xb   :  { %s254_s6 = smov 72   ;;  %s2_s7 = smov 3  ;;  %v104_v28 = vsel %vm15_vm0, %v217_v25, %v216_v24  ;;  %v221_v29 = vld [vmem:[%s396_s0 + $0x23] sm:$0x4]   ;;  %v115_v31 = vsel %vm15_vm0, %v219_v27, %v218_v26  ;;  %v222_v34 = vld [vmem:[%s396_s0 + $0x4] ss:$16 sm:%s132_s5]  }
   0xc   :  { %61 = vrot.lane.b32.xlu0 %v60_v16, %s252_s22  ;;  %72 = vrot.lane.b32.xlu1 %v71_v17, %s253_s24  ;;  %s4_s8 = smov 12  ;;  %s255_s9 = smov 64   ;;  %v3_v30 = vld [vmem:[%s396_s0] ss:$16 sm:%s2_s7]   ;;  %vm74_vm8 = vcmask 720512   ;;  %vm85_vm9 = vcmask 654912  }
   0xd   :  { %v220_v32 = vld [vmem:[%s396_s0 + $0x5] ss:$16 sm:%s121_s4]   ;;  %v5_v33 = vld [vmem:[%s396_s0] ss:$16 sm:%s4_s8]   ;;  %s143_s22 = smov 3  ;;  %s256_s23 = smov 56  }
   0xe   :  { %v223_v35 = vld [vmem:[%s396_s0 + $0x22] sm:$0x4]   ;;  %v7_v36 = vsel %vm6_vm1, %v5_v33, %v3_v30  ;;  %s154_s24 = smov 3  ;;  %s257_s25 = smov 48   ;;  %v126_v37 = vsel %vm15_vm0, %v221_v29, %v220_v32  ;;  %v224_v39 = vld [vmem:[%s396_s0 + $0x3] ss:$16 sm:%s143_s22]  }
   0xf   :  { %9 = vst.msk [vmem:[#allocation0] ss:$8 sm:$0xf] %vm8_vm2, %v7_v36   ;;  %v137_v38 = vsel %vm15_vm0, %v223_v35, %v222_v34  ;;  %v225_v40 = vld [vmem:[%s396_s0 + $0x21] sm:$0x4]   ;;  %s165_s5 = smov 3 }
  0x10   :  { %83 = vrot.lane.b32.xlu0 %v82_v22, %s254_s6  ;;  %94 = vrot.lane.b32.xlu1 %v93_v23, %s255_s9  ;;  %v226_v41 = vld [vmem:[%s396_s0 + $0x2] ss:$16 sm:%s154_s24]   ;;  %s258_s6 = smov 40   ;;  %s259_s7 = smov 32   ;;  %v148_v43 = vsel %vm15_vm0, %v225_v40, %v224_v39  ;;  %vm96_vm10 = vcmask 589312   ;;  %vm107_vm11 = vcmask 523712  }
  0x11   :  { %v227_v42 = vld [vmem:[%s396_s0 + $0x20] sm:$0x4]   ;;  %v228_v45 = vld [vmem:[%s396_s0 + $0x1] ss:$16 sm:%s165_s5]   ;;  %s261_s14 = smov 16   ;;  %s262_s15 = smov 8  }
  0x12   :  { %v159_v44 = vsel %vm15_vm0, %v227_v42, %v226_v41  ;;  %v229_v46 = vld [vmem:[%s396_s0 + $0x1f] sm:$0x4]   ;;  %s260_s0 = smov 24   ;;  %vm118_vm12 = vcmask 458112   ;;  %vm129_vm13 = vcmask 392512   ;;  %vm140_vm14 = vcmask 326912  }
  0x13   :  { %v170_v48 = vsel %vm15_vm0, %v229_v46, %v228_v45  ;;  %vm151_vm15 = vcmask 261312   ;;  %vm162_vm0 = vcmask 195712   ;;  %vm173_vm1 = vcmask 130112  }
  0x14   :  { %105 = vrot.lane.b32.xlu0 %v104_v28, %s256_s23  ;;  %116 = vrot.lane.b32.xlu1 %v115_v31, %s257_s25 }
  0x16   :  { %v193_v47 = vld [vmem:[#allocation0 + $0x18] sm:$0x1] }
  0x17   :  { %232 = vst [vmem:[%s397_s1 + $0x3] sm:$0x1] %v193_v47 }
  0x18   :  { %127 = vrot.lane.b32.xlu0 %v126_v37, %s258_s6  ;;  %138 = vrot.lane.b32.xlu1 %v137_v38, %s259_s7 }
  0x1c   :  { %149 = vrot.lane.b32.xlu0 %v148_v43, %s260_s0  ;;  %160 = vrot.lane.b32.xlu1 %v159_v44, %s261_s14 }
  0x20   :  { %171 = vrot.lane.b32.xlu0 %v170_v48, %s262_s15 }
  0x76   :  { %v18_v49 = vpop.permute.xlu0 %17   ;;  %v40_v50 = vpop.permute.xlu1 %39  }
  0x77   :  { %20 = vst.msk [vmem:[#allocation0] ss:$8 sm:$0x7] %vm19_vm3, %v18_v49  }
  0x7a   :  { %v29_v51 = vpop.permute.xlu0 %28   ;;  %v51_v52 = vpop.permute.xlu1 %50  }
  0x7b   :  { %31 = vst.msk [vmem:[#allocation0] ss:$8 sm:$0x7] %vm30_vm4, %v29_v51  }
  0x7c   :  { %42 = vst.msk [vmem:[#allocation0] ss:$8 sm:$0x7] %vm41_vm5, %v40_v50  }
  0x7d   :  { %53 = vst.msk [vmem:[#allocation0] ss:$8 sm:$0x7] %vm52_vm6, %v51_v52  }
  0x7e   :  { %v62_v53 = vpop.permute.xlu0 %61   ;;  %v73_v54 = vpop.permute.xlu1 %72  }
  0x7f   :  { %64 = vst.msk [vmem:[#allocation0] ss:$8 sm:$0x7] %vm63_vm7, %v62_v53  }
  0x80   :  { %75 = vst.msk [vmem:[#allocation0] ss:$8 sm:$0x7] %vm74_vm8, %v73_v54  }
  0x82   :  { %v84_v55 = vpop.permute.xlu0 %83   ;;  %v95_v56 = vpop.permute.xlu1 %94  }
  0x83   :  { %86 = vst.msk [vmem:[#allocation0] ss:$8 sm:$0x7] %vm85_vm9, %v84_v55  }
  0x84   :  { %97 = vst.msk [vmem:[#allocation0] ss:$8 sm:$0x7] %vm96_vm10, %v95_v56  }
  0x86   :  { %v106_v57 = vpop.permute.xlu0 %105   ;;  %v117_v58 = vpop.permute.xlu1 %116  }
  0x87   :  { %108 = vst.msk [vmem:[#allocation0] ss:$8 sm:$0x7] %vm107_vm11, %v106_v57  }
  0x88   :  { %119 = vst.msk [vmem:[#allocation0] ss:$8 sm:$0x7] %vm118_vm12, %v117_v58  }
  0x8a   :  { %v128_v59 = vpop.permute.xlu0 %127   ;;  %v139_v60 = vpop.permute.xlu1 %138  }
  0x8b   :  { %130 = vst.msk [vmem:[#allocation0] ss:$8 sm:$0x7] %vm129_vm13, %v128_v59  }
  0x8c   :  { %141 = vst.msk [vmem:[#allocation0] ss:$8 sm:$0x7] %vm140_vm14, %v139_v60  }
  0x8e   :  { %v150_v61 = vpop.permute.xlu0 %149   ;;  %v161_v62 = vpop.permute.xlu1 %160  }
  0x8f   :  { %152 = vst.msk [vmem:[#allocation0] ss:$8 sm:$0x7] %vm151_vm15, %v150_v61  }
  0x90   :  { %163 = vst.msk [vmem:[#allocation0] ss:$8 sm:$0x7] %vm162_vm0, %v161_v62  }
  0x92   :  { %v172_v63 = vpop.permute.xlu0 %171  }
  0x93   :  { %174 = vst.msk [vmem:[#allocation0] ss:$8 sm:$0x7] %vm173_vm1, %v172_v63  }
  0x9a   :  { %v178_v0 = vld [vmem:[#allocation0] sm:$0x1]  ;;  %v182_v1 = vld [vmem:[#allocation0 + $0x8] sm:$0x1]  ;;  %v187_v2 = vld [vmem:[#allocation0 + $0x10] sm:$0x1] }
  0x9b   :  { %180 = vst [vmem:[%s397_s1] sm:$0x1] %v178_v0  ;;  %230 = vst [vmem:[%s397_s1 + $0x1] sm:$0x1] %v182_v1 }
  0x9c   :  { %231 = vst [vmem:[%s397_s1 + $0x2] sm:$0x1] %v187_v2 }

// kernel: network_forward.1
= control target key start
LH: loop header
LB: loop body
LE: loop exit
PB: predicated region body
PF: predicated region fallthrough
CT: control target
= control target key end

     0   :  { %vm1242_vm0 = vcmask 64512   ;;  %vm2230_vm1 = vmmov 0   ;;  %vm1397_vm2 = vcmask 261120   ;;  %vm1481_vm3 = vcmask 130048   ;;  %s4061_s1 = inlined_call_operand.vmem [shape: f32[1024,392], index: 1, kind: input, shape index: {}]   ;;  %s4062_s0 = inlined_call_operand.vmem [shape: f32[2,1024], index: 0, kind: input, shape index: {}]   ;;  %s4063_s3 = inlined_call_operand.vmem [shape: f32[392,32], index: 3, kind: input, shape index: {}]   ;;  %s4064_s2 = inlined_call_operand.vmem [shape: f32[1,392], index: 2, kind: input, shape index: {}]   ;;  %s4065_s5 = inlined_call_operand.vmem [shape: f32[32,16], index: 5, kind: input, shape index: {}]   ;;  %s4066_s4 = inlined_call_operand.vmem [shape: f32[1,32], index: 4, kind: input, shape index: {}]   ;;  %s4067_s7 = inlined_call_operand.vmem [shape: f32[16,1], index: 7, kind: input, shape index: {}]   ;;  %s4068_s8 = inlined_call_operand.<no memory space> [shape: f32[1,1], index: 8, kind: input, shape index: {}]   ;;  %s4069_s6 = inlined_call_operand.vmem [shape: f32[1,16], index: 6, kind: input, shape index: {}]   ;;  %s4070_s9 = inlined_call_operand.vmem [shape: f32[2,1], index: 9, kind: output, shape index: {}]  }
   0x1   :  { %v37_v0 = vld [vmem:[%s4061_s1 + $0x8] sm:$0xff]  ;;  %v39_v2 = vld [vmem:[%s4061_s1 + $0x18] sm:$0xff]  ;;  %v36_v5 = vld [vmem:[%s4061_s1] sm:$0xff]  ;;  %vm1555_vm4 = vcmask 1024  }
   0x2   :  { %v41_v1 = vld [vmem:[%s4061_s1 + $0x28] sm:$0xff]  ;;  %v43_v4 = vld [vmem:[%s4061_s1 + $0x38] sm:$0xff]  ;;  %v40_v6 = vld [vmem:[%s4061_s1 + $0x20] sm:$0xff] }
   0x3   :  { %v1628_v3 = vpack.c.bf16 %v41_v1, %v37_v0  ;;  %v1884_v7 = vpack.c.bf16 %v43_v4, %v39_v2  ;;  %v1630_v8 = vpack.c.bf16 %v40_v6, %v36_v5  ;;  %v38_v9 = vld [vmem:[%s4061_s1 + $0x10] sm:$0xff]  ;;  %v45_v11 = vld [vmem:[%s4061_s1 + $0x48] sm:$0xff]  ;;  %v47_v14 = vld [vmem:[%s4061_s1 + $0x58] sm:$0xff] }
   0x4   :  { %v42_v10 = vld [vmem:[%s4061_s1 + $0x30] sm:$0xff]  ;;  %v49_v13 = vld [vmem:[%s4061_s1 + $0x68] sm:$0xff]  ;;  %v51_v15 = vld [vmem:[%s4061_s1 + $0x78] sm:$0xff] }
   0x5   :  { %1629 = vmatprep.subr.bf16.mxu0 %v1628_v3  ;;  %v1886_v12 = vpack.c.bf16 %v42_v10, %v38_v9  ;;  %1885 = vmatprep.subr.bf16.mxu1 %v1884_v7  ;;  %v1632_v16 = vpack.c.bf16 %v49_v13, %v45_v11  ;;  %v1888_v17 = vpack.c.bf16 %v51_v15, %v47_v14  ;;  %v44_v18 = vld [vmem:[%s4061_s1 + $0x40] sm:$0xff]  ;;  %v46_v20 = vld [vmem:[%s4061_s1 + $0x50] sm:$0xff]  ;;  %v53_v23 = vld [vmem:[%s4061_s1 + $0x88] sm:$0xff] }
   0x6   :  { %1631 = vmatpush1.bf16.msra.mxu0 %v1630_v8  ;;  %v48_v19 = vld [vmem:[%s4061_s1 + $0x60] sm:$0xff]  ;;  %v50_v22 = vld [vmem:[%s4061_s1 + $0x70] sm:$0xff]  ;;  %v57_v24 = vld [vmem:[%s4061_s1 + $0xa8] sm:$0xff] }
   0x7   :  { %1887 = vmatpush1.bf16.msra.mxu1 %v1886_v12  ;;  %v1634_v21 = vpack.c.bf16 %v48_v19, %v44_v18  ;;  %1633 = vmatprep.subr.bf16.mxu0 %v1632_v16  ;;  %v1890_v25 = vpack.c.bf16 %v50_v22, %v46_v20  ;;  %v1636_v26 = vpack.c.bf16 %v57_v24, %v53_v23  ;;  %v55_v27 = vld [vmem:[%s4061_s1 + $0x98] sm:$0xff]  ;;  %v52_v29 = vld [vmem:[%s4061_s1 + $0x80] sm:$0xff]  ;;  %v54_v32 = vld [vmem:[%s4061_s1 + $0x90] sm:$0xff] }
   0x8   :  { %1889 = vmatprep.subr.bf16.mxu1 %v1888_v17  ;;  %v59_v28 = vld [vmem:[%s4061_s1 + $0xb8] sm:$0xff]  ;;  %v56_v31 = vld [vmem:[%s4061_s1 + $0xa0] sm:$0xff]  ;;  %v58_v33 = vld [vmem:[%s4061_s1 + $0xb0] sm:$0xff] }
   0x9   :  { %v1892_v30 = vpack.c.bf16 %v59_v28, %v55_v27  ;;  %v1638_v34 = vpack.c.bf16 %v56_v31, %v52_v29  ;;  %v61_v35 = vld [vmem:[%s4061_s1 + $0xc8] sm:$0xff]  ;;  %v63_v37 = vld [vmem:[%s4061_s1 + $0xd8] sm:$0xff]  ;;  %v1894_v38 = vpack.c.bf16 %v58_v33, %v54_v32  ;;  %v60_v41 = vld [vmem:[%s4061_s1 + $0xc0] sm:$0xff] }
   0xa   :  { %1635 = vmatpush1.bf16.msra.mxu0 %v1634_v21  ;;  %v65_v36 = vld [vmem:[%s4061_s1 + $0xe8] sm:$0xff]  ;;  %v67_v40 = vld [vmem:[%s4061_s1 + $0xf8] sm:$0xff]  ;;  %v64_v42 = vld [vmem:[%s4061_s1 + $0xe0] sm:$0xff] }
   0xb   :  { %1891 = vmatpush1.bf16.msra.mxu1 %v1890_v25  ;;  %1637 = vmatprep.subr.bf16.mxu0 %v1636_v26  ;;  %v1640_v39 = vpack.c.bf16 %v65_v36, %v61_v35  ;;  %v1896_v43 = vpack.c.bf16 %v67_v40, %v63_v37  ;;  %v62_v44 = vld [vmem:[%s4061_s1 + $0xd0] sm:$0xff]  ;;  %v69_v46 = vld [vmem:[%s4061_s1 + $0x108] sm:$0xff]  ;;  %v71_v48 = vld [vmem:[%s4061_s1 + $0x118] sm:$0xff]  ;;  %v1642_v50 = vpack.c.bf16 %v64_v42, %v60_v41 }
   0xc   :  { %1893 = vmatprep.subr.bf16.mxu1 %v1892_v30  ;;  %v66_v45 = vld [vmem:[%s4061_s1 + $0xf0] sm:$0xff]  ;;  %v73_v47 = vld [vmem:[%s4061_s1 + $0x128] sm:$0xff]  ;;  %v75_v49 = vld [vmem:[%s4061_s1 + $0x138] sm:$0xff] }
   0xd   :  { %v1898_v51 = vpack.c.bf16 %v66_v45, %v62_v44  ;;  %v1644_v52 = vpack.c.bf16 %v73_v47, %v69_v46  ;;  %v68_v53 = vld [vmem:[%s4061_s1 + $0x100] sm:$0xff]  ;;  %v70_v55 = vld [vmem:[%s4061_s1 + $0x110] sm:$0xff]  ;;  %v1900_v56 = vpack.c.bf16 %v75_v49, %v71_v48  ;;  %v77_v58 = vld [vmem:[%s4061_s1 + $0x148] sm:$0xff]  ;;  %v550_v46 = vlaneseq }
   0xe   :  { %1639 = vmatpush1.bf16.msra.mxu0 %v1638_v34  ;;  %v72_v54 = vld [vmem:[%s4061_s1 + $0x120] sm:$0xff]  ;;  %v74_v57 = vld [vmem:[%s4061_s1 + $0x130] sm:$0xff]  ;;  %v81_v59 = vld [vmem:[%s4061_s1 + $0x168] sm:$0xff]  ;;  %v2227_v47 = vmov 1983009808  }
   0xf   :  { %1895 = vmatpush1.bf16.msra.mxu1 %v1894_v38  ;;  %1641 = vmatprep.subr.bf16.mxu0 %v1640_v39  ;;  %v79_v60 = vld [vmem:[%s4061_s1 + $0x158] sm:$0xff]  ;;  %v1646_v62 = vpack.c.bf16 %v72_v54, %v68_v53  ;;  %v1902_v63 = vpack.c.bf16 %v74_v57, %v70_v55  ;;  %v1648_v0 = vpack.c.bf16 %v81_v59, %v77_v58  ;;  %v76_v1 = vld [vmem:[%s4061_s1 + $0x140] sm:$0xff]  ;;  %v78_v3 = vld [vmem:[%s4061_s1 + $0x150] sm:$0xff]  ;;  %v574_v48 = vunpack.c.l.s4 %v2227_v47 }
  0x10   :  { %1897 = vmatprep.subr.bf16.mxu1 %v1896_v43  ;;  %v83_v61 = vld [vmem:[%s4061_s1 + $0x178] sm:$0xff]  ;;  %v80_v2 = vld [vmem:[%s4061_s1 + $0x160] sm:$0xff]  ;;  %v82_v5 = vld [vmem:[%s4061_s1 + $0x170] sm:$0xff] }
  0x11   :  { %v1904_v4 = vpack.c.bf16 %v83_v61, %v79_v60  ;;  %v85_v6 = vld [vmem:[%s4061_s1 + $0x188] sm:$0xff]  ;;  %v87_v8 = vld [vmem:[%s4061_s1 + $0x198] sm:$0xff]  ;;  %v1650_v10 = vpack.c.bf16 %v80_v2, %v76_v1  ;;  %v1906_v11 = vpack.c.bf16 %v82_v5, %v78_v3  ;;  %v84_v13 = vld [vmem:[%s4061_s1 + $0x180] sm:$0xff]  ;;  %v2533_v61 = vshrl.u32 %v550_v46, 7 }
  0x12   :  { %1643 = vmatpush1.bf16.msra.mxu0 %v1642_v50  ;;  %v89_v7 = vld [vmem:[%s4061_s1 + $0x1a8] sm:$0xff]  ;;  %v91_v9 = vld [vmem:[%s4061_s1 + $0x1b8] sm:$0xff]  ;;  %v88_v14 = vld [vmem:[%s4061_s1 + $0x1a0] sm:$0xff] }
  0x13   :  { %1899 = vmatpush1.bf16.msra.mxu1 %v1898_v51  ;;  %1645 = vmatprep.subr.bf16.mxu0 %v1644_v52  ;;  %v1652_v12 = vpack.c.bf16 %v89_v7, %v85_v6  ;;  %v86_v15 = vld [vmem:[%s4061_s1 + $0x190] sm:$0xff]  ;;  %v1908_v16 = vpack.c.bf16 %v91_v9, %v87_v8  ;;  %v93_v18 = vld [vmem:[%s4061_s1 + $0x1c8] sm:$0xff]  ;;  %v95_v20 = vld [vmem:[%s4061_s1 + $0x1d8] sm:$0xff]  ;;  %v1654_v22 = vpack.c.bf16 %v88_v14, %v84_v13 }
  0x14   :  { %1901 = vmatprep.subr.bf16.mxu1 %v1900_v56  ;;  %v90_v17 = vld [vmem:[%s4061_s1 + $0x1b0] sm:$0xff]  ;;  %v97_v19 = vld [vmem:[%s4061_s1 + $0x1e8] sm:$0xff]  ;;  %v99_v21 = vld [vmem:[%s4061_s1 + $0x1f8] sm:$0xff] }
  0x15   :  { %v1910_v23 = vpack.c.bf16 %v90_v17, %v86_v15  ;;  %v1656_v24 = vpack.c.bf16 %v97_v19, %v93_v18  ;;  %v92_v25 = vld [vmem:[%s4061_s1 + $0x1c0] sm:$0xff]  ;;  %v94_v27 = vld [vmem:[%s4061_s1 + $0x1d0] sm:$0xff]  ;;  %v1912_v28 = vpack.c.bf16 %v99_v21, %v95_v20  ;;  %v101_v30 = vld [vmem:[%s4061_s1 + $0x208] sm:$0xff] }
  0x16   :  { %1647 = vmatpush1.bf16.msra.mxu0 %v1646_v62  ;;  %v96_v26 = vld [vmem:[%s4061_s1 + $0x1e0] sm:$0xff]  ;;  %v98_v29 = vld [vmem:[%s4061_s1 + $0x1f0] sm:$0xff]  ;;  %v105_v31 = vld [vmem:[%s4061_s1 + $0x228] sm:$0xff]  ;;  %v575_v62 = vunpack.c.0.s8 %v574_v48 }
  0x17   :  { %1903 = vmatpush1.bf16.msra.mxu1 %v1902_v63  ;;  %1649 = vmatprep.subr.bf16.mxu0 %v1648_v0  ;;  %v103_v32 = vld [vmem:[%s4061_s1 + $0x218] sm:$0xff]  ;;  %v1658_v34 = vpack.c.bf16 %v96_v26, %v92_v25  ;;  %v1914_v35 = vpack.c.bf16 %v98_v29, %v94_v27  ;;  %v1660_v36 = vpack.c.bf16 %v105_v31, %v101_v30  ;;  %v100_v37 = vld [vmem:[%s4061_s1 + $0x200] sm:$0xff]  ;;  %v102_v39 = vld [vmem:[%s4061_s1 + $0x210] sm:$0xff] }
  0x18   :  { %1905 = vmatprep.subr.bf16.mxu1 %v1904_v4  ;;  %v107_v33 = vld [vmem:[%s4061_s1 + $0x238] sm:$0xff]  ;;  %v104_v38 = vld [vmem:[%s4061_s1 + $0x220] sm:$0xff]  ;;  %v106_v41 = vld [vmem:[%s4061_s1 + $0x230] sm:$0xff] }
  0x19   :  { %v1916_v40 = vpack.c.bf16 %v107_v33, %v103_v32  ;;  %v109_v42 = vld [vmem:[%s4061_s1 + $0x248] sm:$0xff]  ;;  %v111_v44 = vld [vmem:[%s4061_s1 + $0x258] sm:$0xff]  ;;  %v1662_v49 = vpack.c.bf16 %v104_v38, %v100_v37  ;;  %v1918_v50 = vpack.c.bf16 %v106_v41, %v102_v39  ;;  %v108_v52 = vld [vmem:[%s4061_s1 + $0x240] sm:$0xff] }
  0x1a   :  { %1651 = vmatpush1.bf16.msra.mxu0 %v1650_v10  ;;  %v113_v43 = vld [vmem:[%s4061_s1 + $0x268] sm:$0xff]  ;;  %v115_v45 = vld [vmem:[%s4061_s1 + $0x278] sm:$0xff]  ;;  %v112_v53 = vld [vmem:[%s4061_s1 + $0x260] sm:$0xff] }
  0x1b   :  { %1907 = vmatpush1.bf16.msra.mxu1 %v1906_v11  ;;  %1653 = vmatprep.subr.bf16.mxu0 %v1652_v12  ;;  %v1664_v51 = vpack.c.bf16 %v113_v43, %v109_v42  ;;  %v110_v54 = vld [vmem:[%s4061_s1 + $0x250] sm:$0xff]  ;;  %v1920_v55 = vpack.c.bf16 %v115_v45, %v111_v44  ;;  %v117_v57 = vld [vmem:[%s4061_s1 + $0x288] sm:$0xff]  ;;  %v119_v59 = vld [vmem:[%s4061_s1 + $0x298] sm:$0xff]  ;;  %v1666_v63 = vpack.c.bf16 %v112_v53, %v108_v52 }
  0x1c   :  { %1909 = vmatprep.subr.bf16.mxu1 %v1908_v16  ;;  %v114_v56 = vld [vmem:[%s4061_s1 + $0x270] sm:$0xff]  ;;  %v121_v58 = vld [vmem:[%s4061_s1 + $0x2a8] sm:$0xff]  ;;  %v123_v60 = vld [vmem:[%s4061_s1 + $0x2b8] sm:$0xff]  ;;  %v2560_v11 = vsub.s32 %v575_v62, %v2533_v61 }
  0x1d   :  { %v1922_v0 = vpack.c.bf16 %v114_v56, %v110_v54  ;;  %v1668_v1 = vpack.c.bf16 %v121_v58, %v117_v57  ;;  %v116_v2 = vld [vmem:[%s4061_s1 + $0x280] sm:$0xff]  ;;  %v118_v4 = vld [vmem:[%s4061_s1 + $0x290] sm:$0xff]  ;;  %v1924_v5 = vpack.c.bf16 %v123_v60, %v119_v59  ;;  %v125_v7 = vld [vmem:[%s4061_s1 + $0x2c8] sm:$0xff] }
  0x1e   :  { %1655 = vmatpush1.bf16.msra.mxu0 %v1654_v22  ;;  %v120_v3 = vld [vmem:[%s4061_s1 + $0x2a0] sm:$0xff]  ;;  %v122_v6 = vld [vmem:[%s4061_s1 + $0x2b0] sm:$0xff]  ;;  %v129_v8 = vld [vmem:[%s4061_s1 + $0x2e8] sm:$0xff] }
  0x1f   :  { %1911 = vmatpush1.bf16.msra.mxu1 %v1910_v23  ;;  %1657 = vmatprep.subr.bf16.mxu0 %v1656_v24  ;;  %v127_v9 = vld [vmem:[%s4061_s1 + $0x2d8] sm:$0xff]  ;;  %v1670_v12 = vpack.c.bf16 %v120_v3, %v116_v2  ;;  %v124_v13 = vld [vmem:[%s4061_s1 + $0x2c0] sm:$0xff]  ;;  %v1926_v14 = vpack.c.bf16 %v122_v6, %v118_v4  ;;  %v1672_v15 = vpack.c.bf16 %v129_v8, %v125_v7  ;;  %v126_v17 = vld [vmem:[%s4061_s1 + $0x2d0] sm:$0xff] }
  0x20   :  { %1913 = vmatprep.subr.bf16.mxu1 %v1912_v28  ;;  %v131_v10 = vld [vmem:[%s4061_s1 + $0x2f8] sm:$0xff]  ;;  %v128_v16 = vld [vmem:[%s4061_s1 + $0x2e0] sm:$0xff]  ;;  %v130_v18 = vld [vmem:[%s4061_s1 + $0x2f0] sm:$0xff] }
  0x21   :  { %v1928_v19 = vpack.c.bf16 %v131_v10, %v127_v9  ;;  %v133_v20 = vld [vmem:[%s4061_s1 + $0x308] sm:$0xff]  ;;  %v2583_v22 = vld [vmem:[%s4062_s0] sm:$0xff]  ;;  %v135_v23 = vld [vmem:[%s4061_s1 + $0x318] sm:$0xff]  ;;  %v1674_v26 = vpack.c.bf16 %v128_v16, %v124_v13  ;;  %v1930_v27 = vpack.c.bf16 %v130_v18, %v126_v17 }
  0x22   :  { %1659 = vmatpush1.bf16.msra.mxu0 %v1658_v34  ;;  %v137_v21 = vld [vmem:[%s4061_s1 + $0x328] sm:$0xff]  ;;  %v139_v24 = vld [vmem:[%s4061_s1 + $0x338] sm:$0xff]  ;;  %v2593_v25 = vrot.slane %v2583_v22, %v2560_v11  ;;  %v132_v29 = vld [vmem:[%s4061_s1 + $0x300] sm:$0xff]  ;;  %v572_v8 = vcombine.high %v2583_v22, %v2583_v22 }
  0x23   :  { %1915 = vmatpush1.bf16.msra.mxu1 %v1914_v35  ;;  %1661 = vmatprep.subr.bf16.mxu0 %v1660_v36  ;;  %v1676_v28 = vpack.c.bf16 %v137_v21, %v133_v20  ;;  %v136_v30 = vld [vmem:[%s4061_s1 + $0x320] sm:$0xff]  ;;  %v134_v31 = vld [vmem:[%s4061_s1 + $0x310] sm:$0xff]  ;;  %v1932_v33 = vpack.c.bf16 %v139_v24, %v135_v23  ;;  %v141_v35 = vld [vmem:[%s4061_s1 + $0x348] sm:$0xff] }
  0x24   :  { %1917 = vmatprep.subr.bf16.mxu1 %v1916_v40  ;;  %v587_v32 = vcombine.high %v2593_v25, %v2593_v25  ;;  %v138_v34 = vld [vmem:[%s4061_s1 + $0x330] sm:$0xff]  ;;  %v145_v36 = vld [vmem:[%s4061_s1 + $0x368] sm:$0xff]  ;;  %v143_v37 = vld [vmem:[%s4061_s1 + $0x358] sm:$0xff]  ;;  %v1678_v39 = vpack.c.bf16 %v136_v30, %v132_v29  ;;  %v2714_v24 = vrot.slane %v572_v8, %v2560_v11 }
  0x25   :  { %v147_v38 = vld [vmem:[%s4061_s1 + $0x378] sm:$0xff]  ;;  %v1934_v40 = vpack.c.bf16 %v138_v34, %v134_v31  ;;  %v1680_v41 = vpack.c.bf16 %v145_v36, %v141_v35  ;;  %v140_v42 = vld [vmem:[%s4061_s1 + $0x340] sm:$0xff]  ;;  %v142_v44 = vld [vmem:[%s4061_s1 + $0x350] sm:$0xff] }
  0x26   :  { %1663 = vmatpush1.bf16.msra.mxu0 %v1662_v49  ;;  %678 = vmatprep.mubr.f32.mxu0 %v587_v32  ;;  %v144_v43 = vld [vmem:[%s4061_s1 + $0x360] sm:$0xff]  ;;  %v1936_v45 = vpack.c.bf16 %v147_v38, %v143_v37  ;;  %v146_v46 = vld [vmem:[%s4061_s1 + $0x370] sm:$0xff]  ;;  %v149_v47 = vld [vmem:[%s4061_s1 + $0x388] sm:$0xff]  ;;  %v588_v38 = vcombine.high %v2714_v24, %v2714_v24 }
  0x27   :  { %1919 = vmatpush1.bf16.msra.mxu1 %v1918_v50  ;;  %1665 = vmatprep.subr.bf16.mxu0 %v1664_v51  ;;  %v153_v48 = vld [vmem:[%s4061_s1 + $0x3a8] sm:$0xff]  ;;  %v151_v49 = vld [vmem:[%s4061_s1 + $0x398] sm:$0xff]  ;;  %v1682_v51 = vpack.c.bf16 %v144_v43, %v140_v42  ;;  %v1938_v52 = vpack.c.bf16 %v146_v46, %v142_v44  ;;  %v148_v54 = vld [vmem:[%s4061_s1 + $0x380] sm:$0xff] }
  0x28   :  { %1921 = vmatprep.subr.bf16.mxu1 %v1920_v55  ;;  %962 = vmatprep.mubr.f32.mxu1 %v587_v32  ;;  %v155_v50 = vld [vmem:[%s4061_s1 + $0x3b8] sm:$0xff]  ;;  %v1684_v53 = vpack.c.bf16 %v153_v48, %v149_v47  ;;  %v152_v55 = vld [vmem:[%s4061_s1 + $0x3a0] sm:$0xff]  ;;  %v150_v56 = vld [vmem:[%s4061_s1 + $0x390] sm:$0xff] }
  0x29   :  { %v1940_v57 = vpack.c.bf16 %v155_v50, %v151_v49  ;;  %v154_v58 = vld [vmem:[%s4061_s1 + $0x3b0] sm:$0xff]  ;;  %v157_v59 = vld [vmem:[%s4061_s1 + $0x3c8] sm:$0xff]  ;;  %v159_v62 = vld [vmem:[%s4061_s1 + $0x3d8] sm:$0xff] }
  0x2a   :  { %1667 = vmatpush1.bf16.msra.mxu0 %v1666_v63  ;;  %v161_v60 = vld [vmem:[%s4061_s1 + $0x3e8] sm:$0xff]  ;;  %v163_v63 = vld [vmem:[%s4061_s1 + $0x3f8] sm:$0xff]  ;;  %v156_v3 = vld [vmem:[%s4061_s1 + $0x3c0] sm:$0xff] }
  0x2b   :  { %1923 = vmatpush1.bf16.msra.mxu1 %v1922_v0  ;;  %1669 = vmatprep.subr.bf16.mxu0 %v1668_v1  ;;  %v1686_v0 = vpack.c.bf16 %v152_v55, %v148_v54  ;;  %v1942_v1 = vpack.c.bf16 %v154_v58, %v150_v56  ;;  %v1688_v2 = vpack.c.bf16 %v161_v60, %v157_v59  ;;  %v160_v4 = vld [vmem:[%s4061_s1 + $0x3e0] sm:$0xff]  ;;  %v162_v7 = vld [vmem:[%s4061_s1 + $0x3f0] sm:$0xff]  ;;  %v165_v9 = vld [vmem:[%s4061_s1 + $0x408] sm:$0xff] }
  0x2c   :  { %1925 = vmatprep.subr.bf16.mxu1 %v1924_v5  ;;  %v158_v5 = vld [vmem:[%s4061_s1 + $0x3d0] sm:$0xff]  ;;  %v1944_v6 = vpack.c.bf16 %v163_v63, %v159_v62  ;;  %v169_v10 = vld [vmem:[%s4061_s1 + $0x428] sm:$0xff]  ;;  %v171_v13 = vld [vmem:[%s4061_s1 + $0x438] sm:$0xff] }
  0x2d   :  { %v1692_v16 = vpack.c.bf16 %v169_v10, %v165_v9  ;;  %v164_v17 = vld [vmem:[%s4061_s1 + $0x400] sm:$0xff]  ;;  %v170_v21 = vld [vmem:[%s4061_s1 + $0x430] sm:$0xff]  ;;  %v173_v22 = vld [vmem:[%s4061_s1 + $0x448] sm:$0xff] }
  0x2e   :  { %1671 = vmatpush1.bf16.msra.mxu0 %v1670_v12  ;;  %v167_v12 = vld [vmem:[%s4061_s1 + $0x418] sm:$0xff]  ;;  %v168_v18 = vld [vmem:[%s4061_s1 + $0x420] sm:$0xff]  ;;  %v177_v23 = vld [vmem:[%s4061_s1 + $0x468] sm:$0xff] }
  0x2f   :  { %1927 = vmatpush1.bf16.msra.mxu1 %v1926_v14  ;;  %1673 = vmatprep.subr.bf16.mxu0 %v1672_v15  ;;  %v1690_v14 = vpack.c.bf16 %v160_v4, %v156_v3  ;;  %v1946_v15 = vpack.c.bf16 %v162_v7, %v158_v5  ;;  %v1948_v20 = vpack.c.bf16 %v171_v13, %v167_v12  ;;  %v172_v31 = vld [vmem:[%s4061_s1 + $0x440] sm:$0xff]  ;;  %v178_v35 = vld [vmem:[%s4061_s1 + $0x470] sm:$0xff]  ;;  %v181_v36 = vld [vmem:[%s4061_s1 + $0x488] sm:$0xff] }
  0x30   :  { %1929 = vmatprep.subr.bf16.mxu1 %v1928_v19  ;;  %v166_v19 = vld [vmem:[%s4061_s1 + $0x410] sm:$0xff]  ;;  %v1696_v30 = vpack.c.bf16 %v177_v23, %v173_v22  ;;  %v176_v32 = vld [vmem:[%s4061_s1 + $0x460] sm:$0xff]  ;;  %v185_v37 = vld [vmem:[%s4061_s1 + $0x4a8] sm:$0xff] }
  0x31   :  { %v1950_v29 = vpack.c.bf16 %v170_v21, %v166_v19  ;;  %v1700_v43 = vpack.c.bf16 %v185_v37, %v181_v36  ;;  %v180_v44 = vld [vmem:[%s4061_s1 + $0x480] sm:$0xff]  ;;  %v182_v46 = vld [vmem:[%s4061_s1 + $0x490] sm:$0xff]  ;;  %v189_v48 = vld [vmem:[%s4061_s1 + $0x4c8] sm:$0xff] }
  0x32   :  { %1675 = vmatpush1.bf16.msra.mxu0 %v1674_v26  ;;  %v175_v26 = vld [vmem:[%s4061_s1 + $0x458] sm:$0xff]  ;;  %v193_v49 = vld [vmem:[%s4061_s1 + $0x4e8] sm:$0xff]  ;;  %v188_v55 = vld [vmem:[%s4061_s1 + $0x4c0] sm:$0xff] }
  0x33   :  { %1931 = vmatpush1.bf16.msra.mxu1 %v1930_v27  ;;  %1677 = vmatprep.subr.bf16.mxu0 %v1676_v28  ;;  %v179_v27 = vld [vmem:[%s4061_s1 + $0x478] sm:$0xff]  ;;  %v1694_v28 = vpack.c.bf16 %v168_v18, %v164_v17  ;;  %v1704_v54 = vpack.c.bf16 %v193_v49, %v189_v48  ;;  %v192_v56 = vld [vmem:[%s4061_s1 + $0x4e0] sm:$0xff]  ;;  %v194_v59 = vld [vmem:[%s4061_s1 + $0x4f0] sm:$0xff] }
  0x34   :  { %1933 = vmatprep.subr.bf16.mxu1 %v1932_v33  ;;  %v174_v33 = vld [vmem:[%s4061_s1 + $0x450] sm:$0xff]  ;;  %v1952_v34 = vpack.c.bf16 %v179_v27, %v175_v26  ;;  %v191_v50 = vld [vmem:[%s4061_s1 + $0x4d8] sm:$0xff]  ;;  %v197_v60 = vld [vmem:[%s4061_s1 + $0x508] sm:$0xff] }
  0x35   :  { %v1954_v42 = vpack.c.bf16 %v178_v35, %v174_v33  ;;  %v201_v62 = vld [vmem:[%s4061_s1 + $0x528] sm:$0xff]  ;;  %v199_v63 = vld [vmem:[%s4061_s1 + $0x518] sm:$0xff]  ;;  %v196_v4 = vld [vmem:[%s4061_s1 + $0x500] sm:$0xff] }
  0x36   :  { %1679 = vmatpush1.bf16.msra.mxu0 %v1678_v39  ;;  %v183_v39 = vld [vmem:[%s4061_s1 + $0x498] sm:$0xff]  ;;  %v1708_v3 = vpack.c.bf16 %v201_v62, %v197_v60  ;;  %v200_v5 = vld [vmem:[%s4061_s1 + $0x520] sm:$0xff]  ;;  %v202_v8 = vld [vmem:[%s4061_s1 + $0x530] sm:$0xff] }
  0x37   :  { %1935 = vmatpush1.bf16.msra.mxu1 %v1934_v40  ;;  %1681 = vmatprep.subr.bf16.mxu0 %v1680_v41  ;;  %v187_v40 = vld [vmem:[%s4061_s1 + $0x4b8] sm:$0xff]  ;;  %v1698_v41 = vpack.c.bf16 %v176_v32, %v172_v31  ;;  %v205_v9 = vld [vmem:[%s4061_s1 + $0x548] sm:$0xff]  ;;  %v204_v17 = vld [vmem:[%s4061_s1 + $0x540] sm:$0xff] }
  0x38   :  { %1937 = vmatprep.subr.bf16.mxu1 %v1936_v45  ;;  %v184_v45 = vld [vmem:[%s4061_s1 + $0x4a0] sm:$0xff]  ;;  %v1956_v47 = vpack.c.bf16 %v187_v40, %v183_v39  ;;  %v209_v10 = vld [vmem:[%s4061_s1 + $0x568] sm:$0xff]  ;;  %v207_v12 = vld [vmem:[%s4061_s1 + $0x558] sm:$0xff] }
  0x39   :  { %v211_v13 = vld [vmem:[%s4061_s1 + $0x578] sm:$0xff]  ;;  %v208_v18 = vld [vmem:[%s4061_s1 + $0x560] sm:$0xff]  ;;  %v206_v19 = vld [vmem:[%s4061_s1 + $0x550] sm:$0xff] }
  0x3a   :  { %1683 = vmatpush1.bf16.msra.mxu0 %v1682_v51  ;;  %v195_v51 = vld [vmem:[%s4061_s1 + $0x4f8] sm:$0xff]  ;;  %v210_v21 = vld [vmem:[%s4061_s1 + $0x570] sm:$0xff]  ;;  %v213_v22 = vld [vmem:[%s4061_s1 + $0x588] sm:$0xff] }
  0x3b   :  { %1939 = vmatpush1.bf16.msra.mxu1 %v1938_v52  ;;  %1685 = vmatprep.subr.bf16.mxu0 %v1684_v53  ;;  %v1702_v52 = vpack.c.bf16 %v184_v45, %v180_v44  ;;  %v1960_v58 = vpack.c.bf16 %v195_v51, %v191_v50  ;;  %v217_v23 = vld [vmem:[%s4061_s1 + $0x5a8] sm:$0xff]  ;;  %v215_v26 = vld [vmem:[%s4061_s1 + $0x598] sm:$0xff]  ;;  %v212_v31 = vld [vmem:[%s4061_s1 + $0x580] sm:$0xff] }
  0x3c   :  { %1941 = vmatprep.subr.bf16.mxu1 %v1940_v57  ;;  %v190_v57 = vld [vmem:[%s4061_s1 + $0x4d0] sm:$0xff]  ;;  %v219_v27 = vld [vmem:[%s4061_s1 + $0x5b8] sm:$0xff]  ;;  %v216_v32 = vld [vmem:[%s4061_s1 + $0x5a0] sm:$0xff] }
  0x3d   :  { %v214_v33 = vld [vmem:[%s4061_s1 + $0x590] sm:$0xff]  ;;  %v221_v36 = vld [vmem:[%s4061_s1 + $0x5c8] sm:$0xff]  ;;  %v227_v39 = vld [vmem:[%s4061_s1 + $0x5f8] sm:$0xff]  ;;  %v1718_v40 = vpack.c.bf16 %v216_v32, %v212_v31 }
  0x3e   :  { %1687 = vmatpush1.bf16.msra.mxu0 %v1686_v0  ;;  %v203_v0 = vld [vmem:[%s4061_s1 + $0x538] sm:$0xff]  ;;  %v218_v35 = vld [vmem:[%s4061_s1 + $0x5b0] sm:$0xff]  ;;  %v225_v37 = vld [vmem:[%s4061_s1 + $0x5e8] sm:$0xff] }
  0x3f   :  { %1943 = vmatpush1.bf16.msra.mxu1 %v1942_v1  ;;  %1689 = vmatprep.subr.bf16.mxu0 %v1688_v2  ;;  %v1706_v1 = vpack.c.bf16 %v192_v56, %v188_v55  ;;  %v1962_v2 = vpack.c.bf16 %v194_v59, %v190_v57  ;;  %v1964_v7 = vpack.c.bf16 %v203_v0, %v199_v63  ;;  %v224_v44 = vld [vmem:[%s4061_s1 + $0x5e0] sm:$0xff]  ;;  %v222_v45 = vld [vmem:[%s4061_s1 + $0x5d0] sm:$0xff]  ;;  %v233_v48 = vld [vmem:[%s4061_s1 + $0x628] sm:$0xff] }
  0x40   :  { %1945 = vmatprep.subr.bf16.mxu1 %v1944_v6  ;;  %v198_v6 = vld [vmem:[%s4061_s1 + $0x510] sm:$0xff]  ;;  %v231_v49 = vld [vmem:[%s4061_s1 + $0x618] sm:$0xff]  ;;  %v232_v55 = vld [vmem:[%s4061_s1 + $0x620] sm:$0xff] }
  0x41   :  { %v235_v50 = vld [vmem:[%s4061_s1 + $0x638] sm:$0xff]  ;;  %v230_v56 = vld [vmem:[%s4061_s1 + $0x610] sm:$0xff]  ;;  %v237_v59 = vld [vmem:[%s4061_s1 + $0x648] sm:$0xff] }
  0x42   :  { %1691 = vmatpush1.bf16.msra.mxu0 %v1690_v14  ;;  %v1710_v14 = vpack.c.bf16 %v200_v5, %v196_v4  ;;  %v1980_v57 = vpack.c.bf16 %v235_v50, %v231_v49  ;;  %v241_v60 = vld [vmem:[%s4061_s1 + $0x668] sm:$0xff]  ;;  %v239_v62 = vld [vmem:[%s4061_s1 + $0x658] sm:$0xff]  ;;  %v240_v4 = vld [vmem:[%s4061_s1 + $0x660] sm:$0xff] }
  0x43   :  { %1947 = vmatpush1.bf16.msra.mxu1 %v1946_v15  ;;  %1693 = vmatprep.subr.bf16.mxu0 %v1692_v16  ;;  %v1966_v15 = vpack.c.bf16 %v202_v8, %v198_v6  ;;  %v1712_v16 = vpack.c.bf16 %v209_v10, %v205_v9  ;;  %v243_v63 = vld [vmem:[%s4061_s1 + $0x678] sm:$0xff]  ;;  %v238_v5 = vld [vmem:[%s4061_s1 + $0x650] sm:$0xff]  ;;  %v245_v8 = vld [vmem:[%s4061_s1 + $0x688] sm:$0xff] }
  0x44   :  { %1949 = vmatprep.subr.bf16.mxu1 %v1948_v20  ;;  %v1968_v20 = vpack.c.bf16 %v211_v13, %v207_v12  ;;  %v1984_v6 = vpack.c.bf16 %v243_v63, %v239_v62  ;;  %v249_v9 = vld [vmem:[%s4061_s1 + $0x6a8] sm:$0xff]  ;;  %v247_v10 = vld [vmem:[%s4061_s1 + $0x698] sm:$0xff]  ;;  %v256_v31 = vld [vmem:[%s4061_s1 + $0x6e0] sm:$0xff] }
  0x45   :  { %679 = vmatmul.mubr.f32.vlgmr.msra.gmra.mrb[0].mxu0 %v2593_v25  ;;  %v251_v12 = vld [vmem:[%s4061_s1 + $0x6b8] sm:$0xff]  ;;  %v254_v32 = vld [vmem:[%s4061_s1 + $0x6d0] sm:$0xff] }
  0x46   :  { %1695 = vmatpush1.bf16.msra.mxu0 %v1694_v28  ;;  %963 = vmatmul.mubr.f32.vlgmr.msra.gmra.mrb[0].mxu1 %v2593_v25  ;;  %v186_v25 = vld [vmem:[%s4061_s1 + $0x4b0] sm:$0xff]  ;;  %v1714_v28 = vpack.c.bf16 %v208_v18, %v204_v17  ;;  %v248_v17 = vld [vmem:[%s4061_s1 + $0x6a0] sm:$0xff]  ;;  %v275_v49 = vld [vmem:[%s4061_s1 + $0x778] sm:$0xff] }
  0x47   :  { %1951 = vmatpush1.bf16.msra.mxu1 %v1950_v29  ;;  %1697 = vmatprep.subr.bf16.mxu0 %v1696_v30  ;;  %v1958_v53 = vpack.c.bf16 %v186_v25, %v182_v46  ;;  %v1970_v29 = vpack.c.bf16 %v210_v21, %v206_v19  ;;  %v1716_v30 = vpack.c.bf16 %v217_v23, %v213_v22  ;;  %v229_v25 = vld [vmem:[%s4061_s1 + $0x608] sm:$0xff]  ;;  %v246_v18 = vld [vmem:[%s4061_s1 + $0x690] sm:$0xff]  ;;  %v255_v23 = vld [vmem:[%s4061_s1 + $0x6d8] sm:$0xff] }
  0x48   :  { %1953 = vmatprep.subr.bf16.mxu1 %v1952_v34  ;;  %749 = vmatprep.mubr.f32.mxu0 %v588_v38  ;;  %v1972_v34 = vpack.c.bf16 %v219_v27, %v215_v26  ;;  %v1988_v19 = vpack.c.bf16 %v251_v12, %v247_v10  ;;  %v253_v21 = vld [vmem:[%s4061_s1 + $0x6c8] sm:$0xff]  ;;  %v259_v26 = vld [vmem:[%s4061_s1 + $0x6f8] sm:$0xff] }
  0x49   :  { %1033 = vmatprep.mubr.f32.mxu1 %v588_v38  ;;  %v223_v38 = vld [vmem:[%s4061_s1 + $0x5d8] sm:$0xff]  ;;  %v257_v22 = vld [vmem:[%s4061_s1 + $0x6e8] sm:$0xff] }
  0x4a   :  { %1699 = vmatpush1.bf16.msra.mxu0 %v1698_v41  ;;  %v1974_v41 = vpack.c.bf16 %v218_v35, %v214_v33  ;;  %v1976_v46 = vpack.c.bf16 %v227_v39, %v223_v38  ;;  %v1992_v33 = vpack.c.bf16 %v259_v26, %v255_v23  ;;  %v261_v35 = vld [vmem:[%s4061_s1 + $0x708] sm:$0xff]  ;;  %v267_v38 = vld [vmem:[%s4061_s1 + $0x738] sm:$0xff] }
  0x4b   :  { %1955 = vmatpush1.bf16.msra.mxu1 %v1954_v42  ;;  %1701 = vmatprep.subr.bf16.mxu0 %v1700_v43  ;;  %v1720_v42 = vpack.c.bf16 %v225_v37, %v221_v36  ;;  %v220_v43 = vld [vmem:[%s4061_s1 + $0x5c0] sm:$0xff]  ;;  %v265_v36 = vld [vmem:[%s4061_s1 + $0x728] sm:$0xff]  ;;  %v263_v37 = vld [vmem:[%s4061_s1 + $0x718] sm:$0xff] }
  0x4c   :  { %1957 = vmatprep.subr.bf16.mxu1 %v1956_v47  ;;  %v226_v47 = vld [vmem:[%s4061_s1 + $0x5f0] sm:$0xff]  ;;  %v1722_v51 = vpack.c.bf16 %v224_v44, %v220_v43  ;;  %v264_v43 = vld [vmem:[%s4061_s1 + $0x720] sm:$0xff]  ;;  %v283_v62 = vld [vmem:[%s4061_s1 + $0x7b8] sm:$0xff] }
  0x4d   :  { %v262_v44 = vld [vmem:[%s4061_s1 + $0x710] sm:$0xff]  ;;  %v291_v10 = vld [vmem:[%s4061_s1 + $0x7f8] sm:$0xff] }
  0x4e   :  { %1703 = vmatpush1.bf16.msra.mxu0 %v1702_v52  ;;  %v1978_v52 = vpack.c.bf16 %v226_v47, %v222_v45  ;;  %v1996_v45 = vpack.c.bf16 %v267_v38, %v263_v37  ;;  %v269_v47 = vld [vmem:[%s4061_s1 + $0x748] sm:$0xff]  ;;  %v295_v23 = vld [vmem:[%s4061_s1 + $0x818] sm:$0xff] }
  0x4f   :  { %1959 = vmatpush1.bf16.msra.mxu1 %v1958_v53  ;;  %1705 = vmatprep.subr.bf16.mxu0 %v1704_v54  ;;  %v1724_v53 = vpack.c.bf16 %v233_v48, %v229_v25  ;;  %v228_v54 = vld [vmem:[%s4061_s1 + $0x600] sm:$0xff]  ;;  %v273_v25 = vld [vmem:[%s4061_s1 + $0x768] sm:$0xff]  ;;  %v271_v48 = vld [vmem:[%s4061_s1 + $0x758] sm:$0xff] }
  0x50   :  { %1961 = vmatprep.subr.bf16.mxu1 %v1960_v58  ;;  %v234_v58 = vld [vmem:[%s4061_s1 + $0x630] sm:$0xff]  ;;  %v1726_v0 = vpack.c.bf16 %v232_v55, %v228_v54  ;;  %v272_v54 = vld [vmem:[%s4061_s1 + $0x760] sm:$0xff]  ;;  %v299_v26 = vld [vmem:[%s4061_s1 + $0x838] sm:$0xff] }
  0x51   :  { %v270_v55 = vld [vmem:[%s4061_s1 + $0x750] sm:$0xff]  ;;  %v303_v38 = vld [vmem:[%s4061_s1 + $0x858] sm:$0xff] }
  0x52   :  { %1707 = vmatpush1.bf16.msra.mxu0 %v1706_v1  ;;  %v1982_v1 = vpack.c.bf16 %v234_v58, %v230_v56  ;;  %v2000_v56 = vpack.c.bf16 %v275_v49, %v271_v48  ;;  %v277_v58 = vld [vmem:[%s4061_s1 + $0x788] sm:$0xff] }
  0x53   :  { %1963 = vmatpush1.bf16.msra.mxu1 %v1962_v2  ;;  %1709 = vmatprep.subr.bf16.mxu0 %v1708_v3  ;;  %v1728_v2 = vpack.c.bf16 %v241_v60, %v237_v59  ;;  %v236_v3 = vld [vmem:[%s4061_s1 + $0x640] sm:$0xff]  ;;  %v281_v59 = vld [vmem:[%s4061_s1 + $0x7a8] sm:$0xff]  ;;  %v279_v60 = vld [vmem:[%s4061_s1 + $0x798] sm:$0xff] }
  0x54   :  { %1965 = vmatprep.subr.bf16.mxu1 %v1964_v7  ;;  %v242_v7 = vld [vmem:[%s4061_s1 + $0x670] sm:$0xff]  ;;  %v1730_v13 = vpack.c.bf16 %v240_v4, %v236_v3  ;;  %v280_v3 = vld [vmem:[%s4061_s1 + $0x7a0] sm:$0xff]  ;;  %v313_v48 = vld [vmem:[%s4061_s1 + $0x8a8] sm:$0xff] }
  0x55   :  { %v278_v4 = vld [vmem:[%s4061_s1 + $0x790] sm:$0xff] }
  0x56   :  { %1711 = vmatpush1.bf16.msra.mxu0 %v1710_v14  ;;  %v1986_v14 = vpack.c.bf16 %v242_v7, %v238_v5  ;;  %v2004_v5 = vpack.c.bf16 %v283_v62, %v279_v60  ;;  %v285_v7 = vld [vmem:[%s4061_s1 + $0x7c8] sm:$0xff]  ;;  %v319_v62 = vld [vmem:[%s4061_s1 + $0x8d8] sm:$0xff] }
  0x57   :  { %1967 = vmatpush1.bf16.msra.mxu1 %v1966_v15  ;;  %1713 = vmatprep.subr.bf16.mxu0 %v1712_v16  ;;  %v1732_v15 = vpack.c.bf16 %v249_v9, %v245_v8  ;;  %v244_v16 = vld [vmem:[%s4061_s1 + $0x680] sm:$0xff]  ;;  %v289_v8 = vld [vmem:[%s4061_s1 + $0x7e8] sm:$0xff]  ;;  %v287_v9 = vld [vmem:[%s4061_s1 + $0x7d8] sm:$0xff] }
  0x58   :  { %1969 = vmatprep.subr.bf16.mxu1 %v1968_v20  ;;  %v250_v20 = vld [vmem:[%s4061_s1 + $0x6b0] sm:$0xff]  ;;  %v1734_v27 = vpack.c.bf16 %v248_v17, %v244_v16  ;;  %v288_v16 = vld [vmem:[%s4061_s1 + $0x7e0] sm:$0xff]  ;;  %v321_v60 = vld [vmem:[%s4061_s1 + $0x8e8] sm:$0xff] }
  0x59   :  { %v286_v17 = vld [vmem:[%s4061_s1 + $0x7d0] sm:$0xff] }
  0x5a   :  { %1715 = vmatpush1.bf16.msra.mxu0 %v1714_v28  ;;  %v1990_v28 = vpack.c.bf16 %v250_v20, %v246_v18  ;;  %v2008_v18 = vpack.c.bf16 %v291_v10, %v287_v9  ;;  %v293_v20 = vld [vmem:[%s4061_s1 + $0x808] sm:$0xff]  ;;  %v327_v10 = vld [vmem:[%s4061_s1 + $0x918] sm:$0xff] }
  0x5b   :  { %1971 = vmatpush1.bf16.msra.mxu1 %v1970_v29  ;;  %1717 = vmatprep.subr.bf16.mxu0 %v1716_v30  ;;  %v1736_v29 = vpack.c.bf16 %v257_v22, %v253_v21  ;;  %v252_v30 = vld [vmem:[%s4061_s1 + $0x6c0] sm:$0xff]  ;;  %v297_v21 = vld [vmem:[%s4061_s1 + $0x828] sm:$0xff] }
  0x5c   :  { %1973 = vmatprep.subr.bf16.mxu1 %v1972_v34  ;;  %v258_v34 = vld [vmem:[%s4061_s1 + $0x6f0] sm:$0xff]  ;;  %v1738_v39 = vpack.c.bf16 %v256_v31, %v252_v30  ;;  %v3083_v22 = vld [vmem:[%s4062_s0 + $0x8] sm:$0xff]  ;;  %v292_v30 = vld [vmem:[%s4061_s1 + $0x800] sm:$0xff] }
  0x5d   :  { %v296_v31 = vld [vmem:[%s4061_s1 + $0x820] sm:$0xff]  ;;  %v3111_v37 = vrot.slane %v3083_v22, %v2560_v11  ;;  %v329_v9 = vld [vmem:[%s4061_s1 + $0x928] sm:$0xff] }
  0x5e   :  { %1719 = vmatpush1.bf16.msra.mxu0 %v1718_v40  ;;  %v1994_v40 = vpack.c.bf16 %v258_v34, %v254_v32  ;;  %v294_v32 = vld [vmem:[%s4061_s1 + $0x810] sm:$0xff] }
  0x5f   :  { %1975 = vmatpush1.bf16.msra.mxu1 %v1974_v41  ;;  %1721 = vmatprep.subr.bf16.mxu0 %v1720_v42  ;;  %v1740_v41 = vpack.c.bf16 %v265_v36, %v261_v35  ;;  %v260_v42 = vld [vmem:[%s4061_s1 + $0x700] sm:$0xff]  ;;  %v298_v34 = vld [vmem:[%s4061_s1 + $0x830] sm:$0xff]  ;;  %v301_v35 = vld [vmem:[%s4061_s1 + $0x848] sm:$0xff]  ;;  %v604_v49 = vcombine.high %v3111_v37, %v3111_v37 }
  0x60   :  { %1977 = vmatprep.subr.bf16.mxu1 %v1976_v46  ;;  %v266_v46 = vld [vmem:[%s4061_s1 + $0x730] sm:$0xff]  ;;  %v1742_v50 = vpack.c.bf16 %v264_v43, %v260_v42  ;;  %v305_v36 = vld [vmem:[%s4061_s1 + $0x868] sm:$0xff]  ;;  %v300_v43 = vld [vmem:[%s4061_s1 + $0x840] sm:$0xff] }
  0x61   :  { %v1760_v42 = vpack.c.bf16 %v305_v36, %v301_v35  ;;  %v338_v35 = vld [vmem:[%s4061_s1 + $0x970] sm:$0xff]  ;;  %v341_v36 = vld [vmem:[%s4061_s1 + $0x988] sm:$0xff] }
  0x62   :  { %1723 = vmatpush1.bf16.msra.mxu0 %v1722_v51  ;;  %v1998_v51 = vpack.c.bf16 %v266_v46, %v262_v44  ;;  %v304_v44 = vld [vmem:[%s4061_s1 + $0x860] sm:$0xff] }
  0x63   :  { %1979 = vmatpush1.bf16.msra.mxu1 %v1978_v52  ;;  %1725 = vmatprep.subr.bf16.mxu0 %v1724_v53  ;;  %v1744_v52 = vpack.c.bf16 %v273_v25, %v269_v47  ;;  %v268_v53 = vld [vmem:[%s4061_s1 + $0x740] sm:$0xff]  ;;  %v306_v47 = vld [vmem:[%s4061_s1 + $0x870] sm:$0xff]  ;;  %v309_v25 = vld [vmem:[%s4061_s1 + $0x888] sm:$0xff] }
  0x64   :  { %1981 = vmatprep.subr.bf16.mxu1 %v1980_v57  ;;  %v274_v57 = vld [vmem:[%s4061_s1 + $0x770] sm:$0xff]  ;;  %v1746_v63 = vpack.c.bf16 %v272_v54, %v268_v53  ;;  %v1764_v54 = vpack.c.bf16 %v313_v48, %v309_v25  ;;  %v349_v48 = vld [vmem:[%s4061_s1 + $0x9c8] sm:$0xff] }
  0x65   :  { %v346_v25 = vld [vmem:[%s4061_s1 + $0x9b0] sm:$0xff] }
  0x66   :  { %1727 = vmatpush1.bf16.msra.mxu0 %v1726_v0  ;;  %v2002_v0 = vpack.c.bf16 %v274_v57, %v270_v55  ;;  %v308_v55 = vld [vmem:[%s4061_s1 + $0x880] sm:$0xff]  ;;  %v310_v57 = vld [vmem:[%s4061_s1 + $0x890] sm:$0xff] }
  0x67   :  { %1983 = vmatpush1.bf16.msra.mxu1 %v1982_v1  ;;  %1729 = vmatprep.subr.bf16.mxu0 %v1728_v2  ;;  %v1748_v1 = vpack.c.bf16 %v281_v59, %v277_v58  ;;  %v276_v2 = vld [vmem:[%s4061_s1 + $0x780] sm:$0xff]  ;;  %v317_v59 = vld [vmem:[%s4061_s1 + $0x8c8] sm:$0xff] }
  0x68   :  { %1985 = vmatprep.subr.bf16.mxu1 %v1984_v6  ;;  %v282_v6 = vld [vmem:[%s4061_s1 + $0x7b0] sm:$0xff]  ;;  %v1750_v12 = vpack.c.bf16 %v280_v3, %v276_v2  ;;  %v1768_v2 = vpack.c.bf16 %v321_v60, %v317_v59  ;;  %v316_v3 = vld [vmem:[%s4061_s1 + $0x8c0] sm:$0xff]  ;;  %v357_v59 = vld [vmem:[%s4061_s1 + $0xa08] sm:$0xff] }
  0x69   :  { %v361_v60 = vld [vmem:[%s4061_s1 + $0xa28] sm:$0xff] }
  0x6a   :  { %1731 = vmatpush1.bf16.msra.mxu0 %v1730_v13  ;;  %v2006_v13 = vpack.c.bf16 %v282_v6, %v278_v4  ;;  %v320_v4 = vld [vmem:[%s4061_s1 + $0x8e0] sm:$0xff] }
  0x6b   :  { %1987 = vmatpush1.bf16.msra.mxu1 %v1986_v14  ;;  %1733 = vmatprep.subr.bf16.mxu0 %v1732_v15  ;;  %v1752_v14 = vpack.c.bf16 %v289_v8, %v285_v7  ;;  %v284_v15 = vld [vmem:[%s4061_s1 + $0x7c0] sm:$0xff]  ;;  %v322_v7 = vld [vmem:[%s4061_s1 + $0x8f0] sm:$0xff]  ;;  %v325_v8 = vld [vmem:[%s4061_s1 + $0x908] sm:$0xff] }
  0x6c   :  { %1989 = vmatprep.subr.bf16.mxu1 %v1988_v19  ;;  %v290_v19 = vld [vmem:[%s4061_s1 + $0x7f0] sm:$0xff] }
  0x6e   :  { %1735 = vmatpush1.bf16.msra.mxu0 %v1734_v27  ;;  %v1754_v27 = vpack.c.bf16 %v288_v16, %v284_v15  ;;  %v1772_v15 = vpack.c.bf16 %v329_v9, %v325_v8  ;;  %v324_v16 = vld [vmem:[%s4061_s1 + $0x900] sm:$0xff]  ;;  %v365_v8 = vld [vmem:[%s4061_s1 + $0xa48] sm:$0xff] }
  0x6f   :  { %1991 = vmatpush1.bf16.msra.mxu1 %v1990_v28  ;;  %1737 = vmatprep.subr.bf16.mxu0 %v1736_v29  ;;  %v2010_v28 = vpack.c.bf16 %v290_v19, %v286_v17  ;;  %v1756_v29 = vpack.c.bf16 %v297_v21, %v293_v20  ;;  %v328_v17 = vld [vmem:[%s4061_s1 + $0x920] sm:$0xff]  ;;  %v330_v20 = vld [vmem:[%s4061_s1 + $0x930] sm:$0xff]  ;;  %v333_v21 = vld [vmem:[%s4061_s1 + $0x948] sm:$0xff] }
  0x70   :  { %1993 = vmatprep.subr.bf16.mxu1 %v1992_v33  ;;  %v2012_v33 = vpack.c.bf16 %v299_v26, %v295_v23  ;;  %v337_v23 = vld [vmem:[%s4061_s1 + $0x968] sm:$0xff]  ;;  %v335_v26 = vld [vmem:[%s4061_s1 + $0x958] sm:$0xff] }
  0x71   :  { %v369_v9 = vld [vmem:[%s4061_s1 + $0xa68] sm:$0xff] }
  0x72   :  { %1739 = vmatpush1.bf16.msra.mxu0 %v1738_v39  ;;  %v307_v39 = vld [vmem:[%s4061_s1 + $0x878] sm:$0xff] }
  0x73   :  { %1995 = vmatpush1.bf16.msra.mxu1 %v1994_v40  ;;  %1741 = vmatprep.subr.bf16.mxu0 %v1740_v41  ;;  %v1758_v40 = vpack.c.bf16 %v296_v31, %v292_v30  ;;  %v2014_v41 = vpack.c.bf16 %v298_v34, %v294_v32  ;;  %v2016_v46 = vpack.c.bf16 %v307_v39, %v303_v38  ;;  %v332_v31 = vld [vmem:[%s4061_s1 + $0x940] sm:$0xff]  ;;  %v345_v38 = vld [vmem:[%s4061_s1 + $0x9a8] sm:$0xff]  ;;  %v343_v39 = vld [vmem:[%s4061_s1 + $0x998] sm:$0xff] }
  0x74   :  { %1997 = vmatprep.subr.bf16.mxu1 %v1996_v45  ;;  %v302_v45 = vld [vmem:[%s4061_s1 + $0x850] sm:$0xff]  ;;  %v1776_v30 = vpack.c.bf16 %v337_v23, %v333_v21  ;;  %v336_v32 = vld [vmem:[%s4061_s1 + $0x960] sm:$0xff]  ;;  %v373_v21 = vld [vmem:[%s4061_s1 + $0xa88] sm:$0xff] }
  0x75   :  { %v2018_v53 = vpack.c.bf16 %v306_v47, %v302_v45  ;;  %v344_v45 = vld [vmem:[%s4061_s1 + $0x9a0] sm:$0xff]  ;;  %v377_v23 = vld [vmem:[%s4061_s1 + $0xaa8] sm:$0xff] }
  0x76   :  { %1743 = vmatpush1.bf16.msra.mxu0 %v1742_v50  ;;  %v311_v50 = vld [vmem:[%s4061_s1 + $0x898] sm:$0xff] }
  0x77   :  { %1999 = vmatpush1.bf16.msra.mxu1 %v1998_v51  ;;  %1745 = vmatprep.subr.bf16.mxu0 %v1744_v52  ;;  %v315_v51 = vld [vmem:[%s4061_s1 + $0x8b8] sm:$0xff]  ;;  %v1762_v52 = vpack.c.bf16 %v304_v44, %v300_v43  ;;  %v1780_v43 = vpack.c.bf16 %v345_v38, %v341_v36  ;;  %v340_v44 = vld [vmem:[%s4061_s1 + $0x980] sm:$0xff]  ;;  %v381_v36 = vld [vmem:[%s4061_s1 + $0xac8] sm:$0xff] }
  0x78   :  { %2001 = vmatprep.subr.bf16.mxu1 %v2000_v56  ;;  %v312_v56 = vld [vmem:[%s4061_s1 + $0x8a0] sm:$0xff]  ;;  %v2020_v58 = vpack.c.bf16 %v315_v51, %v311_v50  ;;  %v351_v50 = vld [vmem:[%s4061_s1 + $0x9d8] sm:$0xff]  ;;  %v385_v38 = vld [vmem:[%s4061_s1 + $0xae8] sm:$0xff] }
  0x79   :  { %v355_v51 = vld [vmem:[%s4061_s1 + $0x9f8] sm:$0xff] }
  0x7a   :  { %1747 = vmatpush1.bf16.msra.mxu0 %v1746_v63  ;;  %v323_v63 = vld [vmem:[%s4061_s1 + $0x8f8] sm:$0xff] }
  0x7b   :  { %2003 = vmatpush1.bf16.msra.mxu1 %v2002_v0  ;;  %1749 = vmatprep.subr.bf16.mxu0 %v1748_v1  ;;  %v1766_v0 = vpack.c.bf16 %v312_v56, %v308_v55  ;;  %v2024_v6 = vpack.c.bf16 %v323_v63, %v319_v62  ;;  %v348_v55 = vld [vmem:[%s4061_s1 + $0x9c0] sm:$0xff]  ;;  %v359_v62 = vld [vmem:[%s4061_s1 + $0xa18] sm:$0xff] }
  0x7c   :  { %2005 = vmatprep.subr.bf16.mxu1 %v2004_v5  ;;  %v318_v5 = vld [vmem:[%s4061_s1 + $0x8d0] sm:$0xff]  ;;  %v352_v56 = vld [vmem:[%s4061_s1 + $0x9e0] sm:$0xff]  ;;  %v363_v63 = vld [vmem:[%s4061_s1 + $0xa38] sm:$0xff] }
  0x7e   :  { %1751 = vmatpush1.bf16.msra.mxu0 %v1750_v12  ;;  %v331_v12 = vld [vmem:[%s4061_s1 + $0x938] sm:$0xff] }
  0x7f   :  { %2007 = vmatpush1.bf16.msra.mxu1 %v2006_v13  ;;  %1753 = vmatprep.subr.bf16.mxu0 %v1752_v14  ;;  %v1770_v13 = vpack.c.bf16 %v320_v4, %v316_v3  ;;  %v2026_v14 = vpack.c.bf16 %v322_v7, %v318_v5  ;;  %v2028_v19 = vpack.c.bf16 %v331_v12, %v327_v10  ;;  %v356_v3 = vld [vmem:[%s4061_s1 + $0xa00] sm:$0xff]  ;;  %v358_v5 = vld [vmem:[%s4061_s1 + $0xa10] sm:$0xff]  ;;  %v367_v10 = vld [vmem:[%s4061_s1 + $0xa58] sm:$0xff] }
  0x80   :  { %2009 = vmatprep.subr.bf16.mxu1 %v2008_v18  ;;  %v326_v18 = vld [vmem:[%s4061_s1 + $0x910] sm:$0xff]  ;;  %v360_v4 = vld [vmem:[%s4061_s1 + $0xa20] sm:$0xff]  ;;  %v371_v12 = vld [vmem:[%s4061_s1 + $0xa78] sm:$0xff] }
  0x81   :  { %v362_v7 = vld [vmem:[%s4061_s1 + $0xa30] sm:$0xff] }
  0x82   :  { %1755 = vmatpush1.bf16.msra.mxu0 %v1754_v27  ;;  %v339_v27 = vld [vmem:[%s4061_s1 + $0x978] sm:$0xff] }
  0x83   :  { %2011 = vmatpush1.bf16.msra.mxu1 %v2010_v28  ;;  %1757 = vmatprep.subr.bf16.mxu0 %v1756_v29  ;;  %v1774_v28 = vpack.c.bf16 %v328_v17, %v324_v16  ;;  %v2030_v29 = vpack.c.bf16 %v330_v20, %v326_v18  ;;  %v2032_v34 = vpack.c.bf16 %v339_v27, %v335_v26  ;;  %v364_v16 = vld [vmem:[%s4061_s1 + $0xa40] sm:$0xff]  ;;  %v366_v18 = vld [vmem:[%s4061_s1 + $0xa50] sm:$0xff]  ;;  %v375_v26 = vld [vmem:[%s4061_s1 + $0xa98] sm:$0xff] }
  0x84   :  { %2013 = vmatprep.subr.bf16.mxu1 %v2012_v33  ;;  %v334_v33 = vld [vmem:[%s4061_s1 + $0x950] sm:$0xff]  ;;  %v368_v17 = vld [vmem:[%s4061_s1 + $0xa60] sm:$0xff]  ;;  %v379_v27 = vld [vmem:[%s4061_s1 + $0xab8] sm:$0xff] }
  0x85   :  { %750 = vmatmul.mubr.f32.vlgmr.msra.gmra.mrb[0].mxu0 %v2714_v24  ;;  %v370_v20 = vld [vmem:[%s4061_s1 + $0xa70] sm:$0xff] }
  0x86   :  { %1759 = vmatpush1.bf16.msra.mxu0 %v1758_v40  ;;  %1034 = vmatmul.mubr.f32.vlgmr.msra.gmra.mrb[0].mxu1 %v2714_v24  ;;  %v314_v24 = vld [vmem:[%s4061_s1 + $0x8b0] sm:$0xff]  ;;  %v347_v40 = vld [vmem:[%s4061_s1 + $0x9b8] sm:$0xff] }
  0x87   :  { %2015 = vmatpush1.bf16.msra.mxu1 %v2014_v41  ;;  %1761 = vmatprep.subr.bf16.mxu0 %v1760_v42  ;;  %v2022_v1 = vpack.c.bf16 %v314_v24, %v310_v57  ;;  %v1778_v41 = vpack.c.bf16 %v336_v32, %v332_v31  ;;  %v2034_v42 = vpack.c.bf16 %v338_v35, %v334_v33  ;;  %v350_v57 = vld [vmem:[%s4061_s1 + $0x9d0] sm:$0xff]  ;;  %v372_v31 = vld [vmem:[%s4061_s1 + $0xa80] sm:$0xff] }
  0x88   :  { %2017 = vmatprep.subr.bf16.mxu1 %v2016_v46  ;;  %820 = vmatprep.mubr.f32.mxu0 %v604_v49  ;;  %v342_v46 = vld [vmem:[%s4061_s1 + $0x990] sm:$0xff]  ;;  %v2036_v47 = vpack.c.bf16 %v347_v40, %v343_v39  ;;  %v376_v32 = vld [vmem:[%s4061_s1 + $0xaa0] sm:$0xff]  ;;  %v383_v39 = vld [vmem:[%s4061_s1 + $0xad8] sm:$0xff] }
  0x89   :  { %1104 = vmatprep.mubr.f32.mxu1 %v604_v49  ;;  %v353_v49 = vld [vmem:[%s4061_s1 + $0x9e8] sm:$0xff]  ;;  %v354_v24 = vld [vmem:[%s4061_s1 + $0x9f0] sm:$0xff]  ;;  %v387_v40 = vld [vmem:[%s4061_s1 + $0xaf8] sm:$0xff] }
  0x8a   :  { %1763 = vmatpush1.bf16.msra.mxu0 %v1762_v52  ;;  %v1782_v52 = vpack.c.bf16 %v344_v45, %v340_v44  ;;  %v374_v33 = vld [vmem:[%s4061_s1 + $0xa90] sm:$0xff]  ;;  %v380_v44 = vld [vmem:[%s4061_s1 + $0xac0] sm:$0xff] }
  0x8b   :  { %2019 = vmatpush1.bf16.msra.mxu1 %v2018_v53  ;;  %1765 = vmatprep.subr.bf16.mxu0 %v1764_v54  ;;  %v2038_v53 = vpack.c.bf16 %v346_v25, %v342_v46  ;;  %v1784_v54 = vpack.c.bf16 %v353_v49, %v349_v48  ;;  %v378_v35 = vld [vmem:[%s4061_s1 + $0xab0] sm:$0xff]  ;;  %v384_v45 = vld [vmem:[%s4061_s1 + $0xae0] sm:$0xff]  ;;  %v389_v48 = vld [vmem:[%s4061_s1 + $0xb08] sm:$0xff] }
  0x8c   :  { %2021 = vmatprep.subr.bf16.mxu1 %v2020_v58  ;;  %v2040_v58 = vpack.c.bf16 %v355_v51, %v351_v50  ;;  %v382_v46 = vld [vmem:[%s4061_s1 + $0xad0] sm:$0xff]  ;;  %v393_v49 = vld [vmem:[%s4061_s1 + $0xb28] sm:$0xff]  ;;  %v391_v50 = vld [vmem:[%s4061_s1 + $0xb18] sm:$0xff] }
  0x8d   :  { %v386_v25 = vld [vmem:[%s4061_s1 + $0xaf0] sm:$0xff]  ;;  %v395_v51 = vld [vmem:[%s4061_s1 + $0xb38] sm:$0xff] }
  0x8e   :  { %1767 = vmatpush1.bf16.msra.mxu0 %v1766_v0  ;;  %v1786_v0 = vpack.c.bf16 %v352_v56, %v348_v55  ;;  %v388_v55 = vld [vmem:[%s4061_s1 + $0xb00] sm:$0xff] }
  0x8f   :  { %2023 = vmatpush1.bf16.msra.mxu1 %v2022_v1  ;;  %1769 = vmatprep.subr.bf16.mxu0 %v1768_v2  ;;  %v2042_v1 = vpack.c.bf16 %v354_v24, %v350_v57  ;;  %v1788_v2 = vpack.c.bf16 %v361_v60, %v357_v59  ;;  %v392_v56 = vld [vmem:[%s4061_s1 + $0xb20] sm:$0xff]  ;;  %v390_v57 = vld [vmem:[%s4061_s1 + $0xb10] sm:$0xff]  ;;  %v397_v59 = vld [vmem:[%s4061_s1 + $0xb48] sm:$0xff] }
  0x90   :  { %2025 = vmatprep.subr.bf16.mxu1 %v2024_v6  ;;  %v2044_v6 = vpack.c.bf16 %v363_v63, %v359_v62  ;;  %v394_v24 = vld [vmem:[%s4061_s1 + $0xb30] sm:$0xff]  ;;  %v401_v60 = vld [vmem:[%s4061_s1 + $0xb68] sm:$0xff]  ;;  %v399_v62 = vld [vmem:[%s4061_s1 + $0xb58] sm:$0xff] }
  0x91   :  { %v403_v63 = vld [vmem:[%s4061_s1 + $0xb78] sm:$0xff] }
  0x92   :  { %1771 = vmatpush1.bf16.msra.mxu0 %v1770_v13  ;;  %v1790_v13 = vpack.c.bf16 %v360_v4, %v356_v3  ;;  %v396_v3 = vld [vmem:[%s4061_s1 + $0xb40] sm:$0xff] }
  0x93   :  { %2027 = vmatpush1.bf16.msra.mxu1 %v2026_v14  ;;  %1773 = vmatprep.subr.bf16.mxu0 %v1772_v15  ;;  %v2046_v14 = vpack.c.bf16 %v362_v7, %v358_v5  ;;  %v1792_v15 = vpack.c.bf16 %v369_v9, %v365_v8  ;;  %v400_v4 = vld [vmem:[%s4061_s1 + $0xb60] sm:$0xff]  ;;  %v398_v5 = vld [vmem:[%s4061_s1 + $0xb50] sm:$0xff]  ;;  %v405_v8 = vld [vmem:[%s4061_s1 + $0xb88] sm:$0xff] }
  0x94   :  { %2029 = vmatprep.subr.bf16.mxu1 %v2028_v19  ;;  %v2048_v19 = vpack.c.bf16 %v371_v12, %v367_v10  ;;  %v402_v7 = vld [vmem:[%s4061_s1 + $0xb70] sm:$0xff]  ;;  %v409_v9 = vld [vmem:[%s4061_s1 + $0xba8] sm:$0xff]  ;;  %v407_v10 = vld [vmem:[%s4061_s1 + $0xb98] sm:$0xff] }
  0x95   :  { %v411_v12 = vld [vmem:[%s4061_s1 + $0xbb8] sm:$0xff] }
  0x96   :  { %1775 = vmatpush1.bf16.msra.mxu0 %v1774_v28  ;;  %v1794_v28 = vpack.c.bf16 %v368_v17, %v364_v16  ;;  %v404_v16 = vld [vmem:[%s4061_s1 + $0xb80] sm:$0xff] }
  0x97   :  { %2031 = vmatpush1.bf16.msra.mxu1 %v2030_v29  ;;  %1777 = vmatprep.subr.bf16.mxu0 %v1776_v30  ;;  %v2050_v29 = vpack.c.bf16 %v370_v20, %v366_v18  ;;  %v1796_v30 = vpack.c.bf16 %v377_v23, %v373_v21  ;;  %v408_v17 = vld [vmem:[%s4061_s1 + $0xba0] sm:$0xff]  ;;  %v406_v18 = vld [vmem:[%s4061_s1 + $0xb90] sm:$0xff]  ;;  %v413_v21 = vld [vmem:[%s4061_s1 + $0xbc8] sm:$0xff] }
  0x98   :  { %2033 = vmatprep.subr.bf16.mxu1 %v2032_v34  ;;  %v2052_v34 = vpack.c.bf16 %v379_v27, %v375_v26  ;;  %v410_v20 = vld [vmem:[%s4061_s1 + $0xbb0] sm:$0xff]  ;;  %v417_v23 = vld [vmem:[%s4061_s1 + $0xbe8] sm:$0xff]  ;;  %v415_v26 = vld [vmem:[%s4061_s1 + $0xbd8] sm:$0xff] }
  0x99   :  { %v419_v27 = vld [vmem:[%s4061_s1 + $0xbf8] sm:$0xff] }
  0x9a   :  { %1779 = vmatpush1.bf16.msra.mxu0 %v1778_v41  ;;  %v1798_v41 = vpack.c.bf16 %v376_v32, %v372_v31  ;;  %v412_v31 = vld [vmem:[%s4061_s1 + $0xbc0] sm:$0xff] }
  0x9b   :  { %2035 = vmatpush1.bf16.msra.mxu1 %v2034_v42  ;;  %1781 = vmatprep.subr.bf16.mxu0 %v1780_v43  ;;  %v2054_v42 = vpack.c.bf16 %v378_v35, %v374_v33  ;;  %v1800_v43 = vpack.c.bf16 %v385_v38, %v381_v36  ;;  %v416_v32 = vld [vmem:[%s4061_s1 + $0xbe0] sm:$0xff]  ;;  %v414_v33 = vld [vmem:[%s4061_s1 + $0xbd0] sm:$0xff]  ;;  %v2072_v35 = vpack.c.bf16 %v419_v27, %v415_v26  ;;  %v421_v38 = vld [vmem:[%s4061_s1 + $0xc08] sm:$0xff] }
  0x9c   :  { %2037 = vmatprep.subr.bf16.mxu1 %v2036_v47  ;;  %v2056_v47 = vpack.c.bf16 %v387_v40, %v383_v39  ;;  %v418_v36 = vld [vmem:[%s4061_s1 + $0xbf0] sm:$0xff]  ;;  %v425_v39 = vld [vmem:[%s4061_s1 + $0xc28] sm:$0xff]  ;;  %v423_v40 = vld [vmem:[%s4061_s1 + $0xc18] sm:$0xff] }
  0x9d   :  { %v455_v26 = vld [vmem:[%s4061_s1 + $0xd18] sm:$0xff] }
  0x9e   :  { %1783 = vmatpush1.bf16.msra.mxu0 %v1782_v52  ;;  %v1802_v52 = vpack.c.bf16 %v384_v45, %v380_v44  ;;  %v420_v44 = vld [vmem:[%s4061_s1 + $0xc00] sm:$0xff]  ;;  %v459_v27 = vld [vmem:[%s4061_s1 + $0xd38] sm:$0xff] }
  0x9f   :  { %2039 = vmatpush1.bf16.msra.mxu1 %v2038_v53  ;;  %1785 = vmatprep.subr.bf16.mxu0 %v1784_v54  ;;  %v2058_v53 = vpack.c.bf16 %v386_v25, %v382_v46  ;;  %v1804_v54 = vpack.c.bf16 %v393_v49, %v389_v48  ;;  %v424_v45 = vld [vmem:[%s4061_s1 + $0xc20] sm:$0xff]  ;;  %v422_v46 = vld [vmem:[%s4061_s1 + $0xc10] sm:$0xff]  ;;  %v429_v48 = vld [vmem:[%s4061_s1 + $0xc48] sm:$0xff] }
  0xa0   :  { %2041 = vmatprep.subr.bf16.mxu1 %v2040_v58  ;;  %v2060_v58 = vpack.c.bf16 %v395_v51, %v391_v50  ;;  %v426_v25 = vld [vmem:[%s4061_s1 + $0xc30] sm:$0xff]  ;;  %v433_v49 = vld [vmem:[%s4061_s1 + $0xc68] sm:$0xff]  ;;  %v431_v51 = vld [vmem:[%s4061_s1 + $0xc58] sm:$0xff] }
  0xa2   :  { %1787 = vmatpush1.bf16.msra.mxu0 %v1786_v0  ;;  %v1806_v0 = vpack.c.bf16 %v392_v56, %v388_v55  ;;  %v1824_v55 = vpack.c.bf16 %v433_v49, %v429_v48  ;;  %v428_v56 = vld [vmem:[%s4061_s1 + $0xc40] sm:$0xff]  ;;  %v473_v48 = vld [vmem:[%s4061_s1 + $0xda8] sm:$0xff]  ;;  %v471_v49 = vld [vmem:[%s4061_s1 + $0xd98] sm:$0xff] }
  0xa3   :  { %2043 = vmatpush1.bf16.msra.mxu1 %v2042_v1  ;;  %1789 = vmatprep.subr.bf16.mxu0 %v1788_v2  ;;  %v2062_v1 = vpack.c.bf16 %v394_v24, %v390_v57  ;;  %v1808_v2 = vpack.c.bf16 %v401_v60, %v397_v59  ;;  %v430_v57 = vld [vmem:[%s4061_s1 + $0xc50] sm:$0xff]  ;;  %v437_v59 = vld [vmem:[%s4061_s1 + $0xc88] sm:$0xff] }
  0xa4   :  { %2045 = vmatprep.subr.bf16.mxu1 %v2044_v6  ;;  %v2064_v6 = vpack.c.bf16 %v403_v63, %v399_v62  ;;  %v434_v24 = vld [vmem:[%s4061_s1 + $0xc70] sm:$0xff]  ;;  %v441_v60 = vld [vmem:[%s4061_s1 + $0xca8] sm:$0xff]  ;;  %v439_v63 = vld [vmem:[%s4061_s1 + $0xc98] sm:$0xff] }
  0xa6   :  { %1791 = vmatpush1.bf16.msra.mxu0 %v1790_v13  ;;  %v1810_v13 = vpack.c.bf16 %v400_v4, %v396_v3  ;;  %v1828_v3 = vpack.c.bf16 %v441_v60, %v437_v59  ;;  %v436_v4 = vld [vmem:[%s4061_s1 + $0xc80] sm:$0xff]  ;;  %v481_v59 = vld [vmem:[%s4061_s1 + $0xde8] sm:$0xff]  ;;  %v479_v60 = vld [vmem:[%s4061_s1 + $0xdd8] sm:$0xff] }
  0xa7   :  { %2047 = vmatpush1.bf16.msra.mxu1 %v2046_v14  ;;  %1793 = vmatprep.subr.bf16.mxu0 %v1792_v15  ;;  %v2066_v14 = vpack.c.bf16 %v402_v7, %v398_v5  ;;  %v1812_v15 = vpack.c.bf16 %v409_v9, %v405_v8  ;;  %v440_v5 = vld [vmem:[%s4061_s1 + $0xca0] sm:$0xff]  ;;  %v445_v8 = vld [vmem:[%s4061_s1 + $0xcc8] sm:$0xff] }
  0xa8   :  { %2049 = vmatprep.subr.bf16.mxu1 %v2048_v19  ;;  %v2068_v19 = vpack.c.bf16 %v411_v12, %v407_v10  ;;  %v449_v9 = vld [vmem:[%s4061_s1 + $0xce8] sm:$0xff]  ;;  %v447_v10 = vld [vmem:[%s4061_s1 + $0xcd8] sm:$0xff] }
  0xa9   :  { %v451_v12 = vld [vmem:[%s4061_s1 + $0xcf8] sm:$0xff] }
  0xaa   :  { %1795 = vmatpush1.bf16.msra.mxu0 %v1794_v28  ;;  %v1814_v28 = vpack.c.bf16 %v408_v17, %v404_v16  ;;  %v444_v16 = vld [vmem:[%s4061_s1 + $0xcc0] sm:$0xff] }
  0xab   :  { %2051 = vmatpush1.bf16.msra.mxu1 %v2050_v29  ;;  %1797 = vmatprep.subr.bf16.mxu0 %v1796_v30  ;;  %v2070_v29 = vpack.c.bf16 %v410_v20, %v406_v18  ;;  %v1816_v30 = vpack.c.bf16 %v417_v23, %v413_v21  ;;  %v448_v17 = vld [vmem:[%s4061_s1 + $0xce0] sm:$0xff]  ;;  %v446_v18 = vld [vmem:[%s4061_s1 + $0xcd0] sm:$0xff]  ;;  %v453_v21 = vld [vmem:[%s4061_s1 + $0xd08] sm:$0xff] }
  0xac   :  { %2053 = vmatprep.subr.bf16.mxu1 %v2052_v34  ;;  %v589_v34 = vcombine.high %v3083_v22, %v3083_v22  ;;  %v427_v22 = vld [vmem:[%s4061_s1 + $0xc38] sm:$0xff]  ;;  %v450_v20 = vld [vmem:[%s4061_s1 + $0xcf0] sm:$0xff]  ;;  %v457_v23 = vld [vmem:[%s4061_s1 + $0xd28] sm:$0xff] }
  0xae   :  { %1799 = vmatpush1.bf16.msra.mxu0 %v1798_v41  ;;  %v1818_v41 = vpack.c.bf16 %v416_v32, %v412_v31  ;;  %v3504_v50 = vrot.slane %v589_v34, %v2560_v11  ;;  %v432_v11 = vld [vmem:[%s4061_s1 + $0xc60] sm:$0xff]  ;;  %v2092_v34 = vpack.c.bf16 %v459_v27, %v455_v26 }
  0xaf   :  { %2055 = vmatpush1.bf16.msra.mxu1 %v2054_v42  ;;  %1801 = vmatprep.subr.bf16.mxu0 %v1800_v43  ;;  %v2074_v42 = vpack.c.bf16 %v418_v36, %v414_v33  ;;  %v1820_v43 = vpack.c.bf16 %v425_v39, %v421_v38  ;;  %v452_v31 = vld [vmem:[%s4061_s1 + $0xd00] sm:$0xff]  ;;  %v454_v33 = vld [vmem:[%s4061_s1 + $0xd10] sm:$0xff]  ;;  %v461_v36 = vld [vmem:[%s4061_s1 + $0xd48] sm:$0xff] }
  0xb0   :  { %2057 = vmatprep.subr.bf16.mxu1 %v2056_v47  ;;  %v2076_v47 = vpack.c.bf16 %v427_v22, %v423_v40  ;;  %v605_v62 = vcombine.high %v3504_v50, %v3504_v50  ;;  %v456_v32 = vld [vmem:[%s4061_s1 + $0xd20] sm:$0xff]  ;;  %v465_v38 = vld [vmem:[%s4061_s1 + $0xd68] sm:$0xff]  ;;  %v463_v39 = vld [vmem:[%s4061_s1 + $0xd58] sm:$0xff] }
  0xb1   :  { %v467_v40 = vld [vmem:[%s4061_s1 + $0xd78] sm:$0xff]  ;;  %v1838_v22 = vpack.c.bf16 %v456_v32, %v452_v31  ;;  %v494_v31 = vld [vmem:[%s4061_s1 + $0xe50] sm:$0xff] }
  0xb2   :  { %1803 = vmatpush1.bf16.msra.mxu0 %v1802_v52  ;;  %v435_v52 = vld [vmem:[%s4061_s1 + $0xc78] sm:$0xff] }
  0xb3   :  { %2059 = vmatpush1.bf16.msra.mxu1 %v2058_v53  ;;  %1805 = vmatprep.subr.bf16.mxu0 %v1804_v54  ;;  %v1822_v53 = vpack.c.bf16 %v424_v45, %v420_v44  ;;  %v2078_v54 = vpack.c.bf16 %v426_v25, %v422_v46  ;;  %v464_v44 = vld [vmem:[%s4061_s1 + $0xd60] sm:$0xff]  ;;  %v462_v45 = vld [vmem:[%s4061_s1 + $0xd50] sm:$0xff]  ;;  %v2096_v46 = vpack.c.bf16 %v467_v40, %v463_v39  ;;  %v469_v25 = vld [vmem:[%s4061_s1 + $0xd88] sm:$0xff] }
  0xb4   :  { %2061 = vmatprep.subr.bf16.mxu1 %v2060_v58  ;;  %v2080_v58 = vpack.c.bf16 %v435_v52, %v431_v51  ;;  %v475_v51 = vld [vmem:[%s4061_s1 + $0xdb8] sm:$0xff] }
  0xb6   :  { %1807 = vmatpush1.bf16.msra.mxu0 %v1806_v0  ;;  %v443_v0 = vld [vmem:[%s4061_s1 + $0xcb8] sm:$0xff] }
  0xb7   :  { %2063 = vmatpush1.bf16.msra.mxu1 %v2062_v1  ;;  %1809 = vmatprep.subr.bf16.mxu0 %v1808_v2  ;;  %v1826_v1 = vpack.c.bf16 %v432_v11, %v428_v56  ;;  %v2082_v2 = vpack.c.bf16 %v434_v24, %v430_v57  ;;  %v2084_v7 = vpack.c.bf16 %v443_v0, %v439_v63  ;;  %v472_v56 = vld [vmem:[%s4061_s1 + $0xda0] sm:$0xff]  ;;  %v470_v11 = vld [vmem:[%s4061_s1 + $0xd90] sm:$0xff]  ;;  %v477_v24 = vld [vmem:[%s4061_s1 + $0xdc8] sm:$0xff] }
  0xb8   :  { %2065 = vmatprep.subr.bf16.mxu1 %v2064_v6  ;;  %v438_v6 = vld [vmem:[%s4061_s1 + $0xc90] sm:$0xff]  ;;  %v2100_v57 = vpack.c.bf16 %v475_v51, %v471_v49 }
  0xba   :  { %1811 = vmatpush1.bf16.msra.mxu0 %v1810_v13  ;;  %v1830_v13 = vpack.c.bf16 %v440_v5, %v436_v4  ;;  %v478_v4 = vld [vmem:[%s4061_s1 + $0xdd0] sm:$0xff] }
  0xbb   :  { %2067 = vmatpush1.bf16.msra.mxu1 %v2066_v14  ;;  %1813 = vmatprep.subr.bf16.mxu0 %v1812_v15  ;;  %v1832_v15 = vpack.c.bf16 %v449_v9, %v445_v8  ;;  %v487_v8 = vld [vmem:[%s4061_s1 + $0xe18] sm:$0xff] }
  0xbc   :  { %2069 = vmatprep.subr.bf16.mxu1 %v2068_v19  ;;  %v2088_v19 = vpack.c.bf16 %v451_v12, %v447_v10  ;;  %v491_v9 = vld [vmem:[%s4061_s1 + $0xe38] sm:$0xff] }
  0xbe   :  { %1815 = vmatpush1.bf16.msra.mxu0 %v1814_v28  ;;  %v1834_v28 = vpack.c.bf16 %v448_v17, %v444_v16  ;;  %v486_v16 = vld [vmem:[%s4061_s1 + $0xe10] sm:$0xff]  ;;  %v2108_v17 = vpack.c.bf16 %v491_v9, %v487_v8 }
  0xbf   :  { %2071 = vmatpush1.bf16.msra.mxu1 %v2070_v29  ;;  %1817 = vmatprep.subr.bf16.mxu0 %v1816_v30  ;;  %v2090_v29 = vpack.c.bf16 %v450_v20, %v446_v18  ;;  %v1836_v30 = vpack.c.bf16 %v457_v23, %v453_v21  ;;  %v490_v18 = vld [vmem:[%s4061_s1 + $0xe30] sm:$0xff]  ;;  %v497_v20 = vld [vmem:[%s4061_s1 + $0xe68] sm:$0xff]  ;;  %v495_v21 = vld [vmem:[%s4061_s1 + $0xe58] sm:$0xff] }
  0xc0   :  { %2073 = vmatprep.subr.bf16.mxu1 %v2072_v35  ;;  %v458_v35 = vld [vmem:[%s4061_s1 + $0xd30] sm:$0xff]  ;;  %v499_v23 = vld [vmem:[%s4061_s1 + $0xe78] sm:$0xff]  ;;  %v2110_v27 = vpack.c.bf16 %v490_v18, %v486_v16  ;;  %v537_v18 = vld [vmem:[%s4061_s1 + $0xfa8] sm:$0xff] }
  0xc1   :  { %v2112_v32 = vpack.c.bf16 %v499_v23, %v495_v21  ;;  %v530_v16 = vld [vmem:[%s4061_s1 + $0xf70] sm:$0xff] }
  0xc2   :  { %1819 = vmatpush1.bf16.msra.mxu0 %v1818_v41  ;;  %v2094_v41 = vpack.c.bf16 %v458_v35, %v454_v33  ;;  %v498_v33 = vld [vmem:[%s4061_s1 + $0xe70] sm:$0xff]  ;;  %v505_v35 = vld [vmem:[%s4061_s1 + $0xea8] sm:$0xff] }
  0xc3   :  { %2075 = vmatpush1.bf16.msra.mxu1 %v2074_v42  ;;  %1821 = vmatprep.subr.bf16.mxu0 %v1820_v43  ;;  %v1840_v42 = vpack.c.bf16 %v465_v38, %v461_v36  ;;  %v460_v43 = vld [vmem:[%s4061_s1 + $0xd40] sm:$0xff]  ;;  %v503_v36 = vld [vmem:[%s4061_s1 + $0xe98] sm:$0xff]  ;;  %v2114_v40 = vpack.c.bf16 %v498_v33, %v494_v31  ;;  %v538_v31 = vld [vmem:[%s4061_s1 + $0xfb0] sm:$0xff] }
  0xc4   :  { %2077 = vmatprep.subr.bf16.mxu1 %v2076_v47  ;;  %v466_v47 = vld [vmem:[%s4061_s1 + $0xd70] sm:$0xff]  ;;  %v1842_v52 = vpack.c.bf16 %v464_v44, %v460_v43  ;;  %v507_v38 = vld [vmem:[%s4061_s1 + $0xeb8] sm:$0xff]  ;;  %v545_v33 = vld [vmem:[%s4061_s1 + $0xfe8] sm:$0xff] }
  0xc5   :  { %821 = vmatmul.mubr.f32.vlgmr.msra.gmra.mrb[0].mxu0 %v3111_v37  ;;  %v502_v43 = vld [vmem:[%s4061_s1 + $0xe90] sm:$0xff]  ;;  %v2116_v44 = vpack.c.bf16 %v507_v38, %v503_v36 }
  0xc6   :  { %1823 = vmatpush1.bf16.msra.mxu0 %v1822_v53  ;;  %1105 = vmatmul.mubr.f32.vlgmr.msra.gmra.mrb[0].mxu1 %v3111_v37  ;;  %v442_v37 = vld [vmem:[%s4061_s1 + $0xcb0] sm:$0xff]  ;;  %v2098_v53 = vpack.c.bf16 %v466_v47, %v462_v45  ;;  %v513_v47 = vld [vmem:[%s4061_s1 + $0xee8] sm:$0xff] }
  0xc7   :  { %2079 = vmatpush1.bf16.msra.mxu1 %v2078_v54  ;;  %1825 = vmatprep.subr.bf16.mxu0 %v1824_v55  ;;  %v2086_v14 = vpack.c.bf16 %v442_v37, %v438_v6  ;;  %v1844_v54 = vpack.c.bf16 %v473_v48, %v469_v25  ;;  %v468_v55 = vld [vmem:[%s4061_s1 + $0xd80] sm:$0xff]  ;;  %v482_v6 = vld [vmem:[%s4061_s1 + $0xdf0] sm:$0xff]  ;;  %v489_v37 = vld [vmem:[%s4061_s1 + $0xe28] sm:$0xff] }
  0xc8   :  { %2081 = vmatprep.subr.bf16.mxu1 %v2080_v58  ;;  %891 = vmatprep.mubr.f32.mxu0 %v605_v62  ;;  %v474_v58 = vld [vmem:[%s4061_s1 + $0xdb0] sm:$0xff]  ;;  %v1846_v63 = vpack.c.bf16 %v472_v56, %v468_v55  ;;  %v2106_v12 = vpack.c.bf16 %v482_v6, %v478_v4  ;;  %v511_v25 = vld [vmem:[%s4061_s1 + $0xed8] sm:$0xff]  ;;  %v529_v6 = vld [vmem:[%s4061_s1 + $0xf68] sm:$0xff] }
  0xc9   :  { %1175 = vmatprep.mubr.f32.mxu1 %v605_v62  ;;  %v483_v62 = vld [vmem:[%s4061_s1 + $0xdf8] sm:$0xff]  ;;  %v2102_v0 = vpack.c.bf16 %v474_v58, %v470_v11  ;;  %v506_v45 = vld [vmem:[%s4061_s1 + $0xeb0] sm:$0xff]  ;;  %v521_v58 = vld [vmem:[%s4061_s1 + $0xf28] sm:$0xff] }
  0xca   :  { %1827 = vmatpush1.bf16.msra.mxu0 %v1826_v1  ;;  %v1848_v1 = vpack.c.bf16 %v481_v59, %v477_v24  ;;  %v2104_v5 = vpack.c.bf16 %v483_v62, %v479_v60  ;;  %v515_v48 = vld [vmem:[%s4061_s1 + $0xef8] sm:$0xff]  ;;  %v2118_v51 = vpack.c.bf16 %v506_v45, %v502_v43  ;;  %v510_v55 = vld [vmem:[%s4061_s1 + $0xed0] sm:$0xff]  ;;  %v1203_v45 = vld [vmem:[%s4063_s3 + $0x88] sm:$0xff] }
  0xcb   :  { %2083 = vmatpush1.bf16.msra.mxu1 %v2082_v2  ;;  %1829 = vmatprep.subr.bf16.mxu0 %v1828_v3  ;;  %v476_v2 = vld [vmem:[%s4061_s1 + $0xdc0] sm:$0xff]  ;;  %v2120_v56 = vpack.c.bf16 %v515_v48, %v511_v25  ;;  %v514_v11 = vld [vmem:[%s4061_s1 + $0xef0] sm:$0xff]  ;;  %v519_v24 = vld [vmem:[%s4061_s1 + $0xf18] sm:$0xff] }
  0xcc   :  { %2085 = vmatprep.subr.bf16.mxu1 %v2084_v7  ;;  %v480_v3 = vld [vmem:[%s4061_s1 + $0xde0] sm:$0xff]  ;;  %v485_v7 = vld [vmem:[%s4061_s1 + $0xe08] sm:$0xff]  ;;  %v523_v59 = vld [vmem:[%s4061_s1 + $0xf38] sm:$0xff]  ;;  %v2122_v62 = vpack.c.bf16 %v514_v11, %v510_v55 }
  0xcd   :  { %v1850_v10 = vpack.c.bf16 %v480_v3, %v476_v2  ;;  %v518_v2 = vld [vmem:[%s4061_s1 + $0xf10] sm:$0xff]  ;;  %v2124_v3 = vpack.c.bf16 %v523_v59, %v519_v24  ;;  %v1218_v25 = vld [vmem:[%s4063_s3 + $0x100] sm:$0xff]  ;;  %v1189_v24 = vld [vmem:[%s4063_s3 + $0x18] sm:$0xff]  ;;  %v2228_v59 = vmov 0.0|0.0  }
  0xce   :  { %1831 = vmatpush1.bf16.msra.mxu0 %v1830_v13  ;;  %v1852_v13 = vpack.c.bf16 %v489_v37, %v485_v7  ;;  %v522_v4 = vld [vmem:[%s4061_s1 + $0xf30] sm:$0xff]  ;;  %v527_v7 = vld [vmem:[%s4061_s1 + $0xf58] sm:$0xff] }
  0xcf   :  { %2087 = vmatpush1.bf16.msra.mxu1 %v2086_v14  ;;  %1833 = vmatprep.subr.bf16.mxu0 %v1832_v15  ;;  %v484_v14 = vld [vmem:[%s4061_s1 + $0xe00] sm:$0xff]  ;;  %v531_v37 = vld [vmem:[%s4061_s1 + $0xf78] sm:$0xff]  ;;  %v2126_v9 = vpack.c.bf16 %v522_v4, %v518_v2  ;;  %v546_v43 = vld [vmem:[%s4061_s1 + $0xff0] sm:$0xff] }
  0xd0   :  { %2089 = vmatprep.subr.bf16.mxu1 %v2088_v19  ;;  %v488_v15 = vld [vmem:[%s4061_s1 + $0xe20] sm:$0xff]  ;;  %v493_v19 = vld [vmem:[%s4061_s1 + $0xe48] sm:$0xff]  ;;  %v1220_v11 = vld [vmem:[%s4063_s3 + $0x110] sm:$0xff] }
  0xd1   :  { %v1854_v26 = vpack.c.bf16 %v488_v15, %v484_v14  ;;  %v526_v14 = vld [vmem:[%s4061_s1 + $0xf50] sm:$0xff]  ;;  %v2128_v15 = vpack.c.bf16 %v531_v37, %v527_v7  ;;  %v1222_v2 = vld [vmem:[%s4063_s3 + $0x120] sm:$0xff]  ;;  %v1209_v7 = vld [vmem:[%s4063_s3 + $0xb8] sm:$0xff] }
  0xd2   :  { %1835 = vmatpush1.bf16.msra.mxu0 %v1834_v28  ;;  %v1856_v28 = vpack.c.bf16 %v497_v20, %v493_v19  ;;  %v535_v19 = vld [vmem:[%s4061_s1 + $0xf98] sm:$0xff]  ;;  %v2130_v23 = vpack.c.bf16 %v530_v16, %v526_v14  ;;  %v1190_v4 = vld [vmem:[%s4063_s3 + $0x20] sm:$0xff]  ;;  %v1211_v16 = vld [vmem:[%s4063_s3 + $0xc8] sm:$0xff] }
  0xd3   :  { %2091 = vmatpush1.bf16.msra.mxu1 %v2090_v29  ;;  %1837 = vmatprep.subr.bf16.mxu0 %v1836_v30  ;;  %v492_v29 = vld [vmem:[%s4061_s1 + $0xe40] sm:$0xff]  ;;  %v539_v20 = vld [vmem:[%s4061_s1 + $0xfb8] sm:$0xff] }
  0xd4   :  { %2093 = vmatprep.subr.bf16.mxu1 %v2092_v34  ;;  %v496_v30 = vld [vmem:[%s4061_s1 + $0xe60] sm:$0xff]  ;;  %v501_v34 = vld [vmem:[%s4061_s1 + $0xe88] sm:$0xff]  ;;  %v1225_v14 = vld [vmem:[%s4063_s3 + $0x138] sm:$0xff] }
  0xd5   :  { %v1858_v39 = vpack.c.bf16 %v496_v30, %v492_v29  ;;  %v534_v29 = vld [vmem:[%s4061_s1 + $0xf90] sm:$0xff]  ;;  %v2132_v30 = vpack.c.bf16 %v539_v20, %v535_v19  ;;  %v1226_v19 = vld [vmem:[%s4063_s3 + $0x140] sm:$0xff] }
  0xd6   :  { %1839 = vmatpush1.bf16.msra.mxu0 %v1838_v22  ;;  %v1860_v22 = vpack.c.bf16 %v505_v35, %v501_v34  ;;  %v543_v34 = vld [vmem:[%s4061_s1 + $0xfd8] sm:$0xff]  ;;  %v2134_v38 = vpack.c.bf16 %v538_v31, %v534_v29  ;;  %v1228_v31 = vld [vmem:[%s4063_s3 + $0x150] sm:$0xff] }
  0xd7   :  { %2095 = vmatpush1.bf16.msra.mxu1 %v2094_v41  ;;  %1841 = vmatprep.subr.bf16.mxu0 %v1840_v42  ;;  %v500_v41 = vld [vmem:[%s4061_s1 + $0xe80] sm:$0xff]  ;;  %v547_v35 = vld [vmem:[%s4061_s1 + $0xff8] sm:$0xff] }
  0xd8   :  { %2097 = vmatprep.subr.bf16.mxu1 %v2096_v46  ;;  %v504_v42 = vld [vmem:[%s4061_s1 + $0xea0] sm:$0xff]  ;;  %v509_v46 = vld [vmem:[%s4061_s1 + $0xec8] sm:$0xff] }
  0xd9   :  { %v1862_v49 = vpack.c.bf16 %v504_v42, %v500_v41  ;;  %v542_v41 = vld [vmem:[%s4061_s1 + $0xfd0] sm:$0xff]  ;;  %v2136_v42 = vpack.c.bf16 %v547_v35, %v543_v34  ;;  %v1197_v34 = vld [vmem:[%s4063_s3 + $0x58] sm:$0xff] }
  0xda   :  { %1843 = vmatpush1.bf16.msra.mxu0 %v1842_v52  ;;  %v1864_v52 = vpack.c.bf16 %v513_v47, %v509_v46  ;;  %v2138_v47 = vpack.c.bf16 %v546_v43, %v542_v41  ;;  %v1229_v35 = vld [vmem:[%s4063_s3 + $0x158] sm:$0xff]  ;;  %v1230_v41 = vld [vmem:[%s4063_s3 + $0x160] sm:$0xff] }
  0xdb   :  { %2099 = vmatpush1.bf16.msra.mxu1 %v2098_v53  ;;  %1845 = vmatprep.subr.bf16.mxu0 %v1844_v54  ;;  %v508_v53 = vld [vmem:[%s4061_s1 + $0xec0] sm:$0xff] }
  0xdc   :  { %2101 = vmatprep.subr.bf16.mxu1 %v2100_v57  ;;  %v512_v54 = vld [vmem:[%s4061_s1 + $0xee0] sm:$0xff]  ;;  %v517_v57 = vld [vmem:[%s4061_s1 + $0xf08] sm:$0xff] }
  0xdd   :  { %v1866_v60 = vpack.c.bf16 %v512_v54, %v508_v53  ;;  %v1204_v53 = vld [vmem:[%s4063_s3 + $0x90] sm:$0xff]  ;;  %v1205_v54 = vld [vmem:[%s4063_s3 + $0x98] sm:$0xff] }
  0xde   :  { %1847 = vmatpush1.bf16.msra.mxu0 %v1846_v63  ;;  %v1868_v63 = vpack.c.bf16 %v521_v58, %v517_v57  ;;  %v2144_v57 = vpack.c.bf16 %v1205_v54, %v1204_v53  ;;  %v1188_v58 = vld [vmem:[%s4063_s3 + $0x10] sm:$0xff]  ;;  %v1201_v54 = vld [vmem:[%s4063_s3 + $0x78] sm:$0xff] }
  0xdf   :  { %2103 = vmatpush1.bf16.msra.mxu1 %v2102_v0  ;;  %1849 = vmatprep.subr.bf16.mxu0 %v1848_v1  ;;  %v516_v0 = vld [vmem:[%s4061_s1 + $0xf00] sm:$0xff]  ;;  %v1200_v53 = vld [vmem:[%s4063_s3 + $0x70] sm:$0xff] }
  0xe0   :  { %2105 = vmatprep.subr.bf16.mxu1 %v2104_v5  ;;  %v520_v1 = vld [vmem:[%s4061_s1 + $0xf20] sm:$0xff]  ;;  %v525_v5 = vld [vmem:[%s4061_s1 + $0xf48] sm:$0xff] }
  0xe1   :  { %v1870_v8 = vpack.c.bf16 %v520_v1, %v516_v0  ;;  %v2146_v0 = vpack.c.bf16 %v1189_v24, %v1188_v58  ;;  %v548_v58 = vld [vmem:[%s4064_s2] sm:$0xf]  ;;  %v560_v24 = vsub.s32 2, %v2533_v61 }
  0xe2   :  { %1851 = vmatpush1.bf16.msra.mxu0 %v1850_v10  ;;  %v1872_v10 = vpack.c.bf16 %v529_v6, %v525_v5  ;;  %v1191_v5 = vld [vmem:[%s4063_s3 + $0x28] sm:$0xff]  ;;  %v1208_v6 = vld [vmem:[%s4063_s3 + $0xb0] sm:$0xff] }
  0xe3   :  { %2107 = vmatpush1.bf16.msra.mxu1 %v2106_v12  ;;  %1853 = vmatprep.subr.bf16.mxu0 %v1852_v13  ;;  %v524_v12 = vld [vmem:[%s4061_s1 + $0xf40] sm:$0xff]  ;;  %v2150_v37 = vpack.c.bf16 %v1191_v5, %v1190_v4 }
  0xe4   :  { %2109 = vmatprep.subr.bf16.mxu1 %v2108_v17  ;;  %v528_v13 = vld [vmem:[%s4061_s1 + $0xf60] sm:$0xff]  ;;  %v533_v17 = vld [vmem:[%s4061_s1 + $0xf88] sm:$0xff] }
  0xe5   :  { %v1874_v21 = vpack.c.bf16 %v528_v13, %v524_v12  ;;  %v1192_v12 = vld [vmem:[%s4063_s3 + $0x30] sm:$0xff]  ;;  %v1193_v13 = vld [vmem:[%s4063_s3 + $0x38] sm:$0xff] }
  0xe6   :  { %1855 = vmatpush1.bf16.msra.mxu0 %v1854_v26  ;;  %v1876_v26 = vpack.c.bf16 %v537_v18, %v533_v17  ;;  %v2154_v17 = vpack.c.bf16 %v1193_v13, %v1192_v12 }
  0xe7   :  { %2111 = vmatpush1.bf16.msra.mxu1 %v2110_v27  ;;  %1857 = vmatprep.subr.bf16.mxu0 %v1856_v28  ;;  %v532_v27 = vld [vmem:[%s4061_s1 + $0xf80] sm:$0xff] }
  0xe8   :  { %2113 = vmatprep.subr.bf16.mxu1 %v2112_v32  ;;  %v536_v28 = vld [vmem:[%s4061_s1 + $0xfa0] sm:$0xff]  ;;  %v541_v32 = vld [vmem:[%s4061_s1 + $0xfc8] sm:$0xff] }
  0xe9   :  { %v1878_v36 = vpack.c.bf16 %v536_v28, %v532_v27  ;;  %v1212_v27 = vld [vmem:[%s4063_s3 + $0xd0] sm:$0xff]  ;;  %v1213_v28 = vld [vmem:[%s4063_s3 + $0xd8] sm:$0xff] }
  0xea   :  { %1859 = vmatpush1.bf16.msra.mxu0 %v1858_v39  ;;  %v1880_v39 = vpack.c.bf16 %v545_v33, %v541_v32  ;;  %v2160_v32 = vpack.c.bf16 %v1213_v28, %v1212_v27  ;;  %v1196_v33 = vld [vmem:[%s4063_s3 + $0x50] sm:$0xff] }
  0xeb   :  { %2115 = vmatpush1.bf16.msra.mxu1 %v2114_v40  ;;  %1861 = vmatprep.subr.bf16.mxu0 %v1860_v22  ;;  %v540_v40 = vld [vmem:[%s4061_s1 + $0xfc0] sm:$0xff] }
  0xec   :  { %2117 = vmatprep.subr.bf16.mxu1 %v2116_v44  ;;  %v544_v22 = vld [vmem:[%s4061_s1 + $0xfe0] sm:$0xff] }
  0xed   :  { %v1202_v44 = vld [vmem:[%s4063_s3 + $0x80] sm:$0xff]  ;;  %v1882_v46 = vpack.c.bf16 %v544_v22, %v540_v40  ;;  %v2188_v40 = vpack.c.bf16 %v1229_v35, %v1228_v31 }
  0xee   :  { %1863 = vmatpush1.bf16.msra.mxu0 %v1862_v49  ;;  %v2140_v48 = vpack.c.bf16 %v1203_v45, %v1202_v44  ;;  %v1186_v49 = vld [vmem:[%s4063_s3] sm:$0xff]  ;;  %v1199_v45 = vld [vmem:[%s4063_s3 + $0x68] sm:$0xff] }
  0xef   :  { %2119 = vmatpush1.bf16.msra.mxu1 %v2118_v51  ;;  %1865 = vmatprep.subr.bf16.mxu0 %v1864_v52  ;;  %v1187_v51 = vld [vmem:[%s4063_s3 + $0x8] sm:$0xff]  ;;  %v1198_v44 = vld [vmem:[%s4063_s3 + $0x60] sm:$0xff] }
  0xf0   :  { %2121 = vmatprep.subr.bf16.mxu1 %v2120_v56  ;;  %v1219_v52 = vld [vmem:[%s4063_s3 + $0x108] sm:$0xff]  ;;  %v2142_v55 = vpack.c.bf16 %v1187_v51, %v1186_v49  ;;  %v1216_v49 = vld [vmem:[%s4063_s3 + $0xf0] sm:$0xff]  ;;  %v1217_v51 = vld [vmem:[%s4063_s3 + $0xf8] sm:$0xff] }
  0xf1   :  { %v2173_v56 = vpack.c.bf16 %v1219_v52, %v1218_v25  ;;  %v1233_v25 = vld [vmem:[%s4063_s3 + $0x178] sm:$0xff]  ;;  %v2168_v52 = vpack.c.bf16 %v1217_v51, %v1216_v49 }
  0xf2   :  { %1867 = vmatpush1.bf16.msra.mxu0 %v1866_v60  ;;  %v1221_v60 = vld [vmem:[%s4063_s3 + $0x118] sm:$0xff] }
  0xf3   :  { %2123 = vmatpush1.bf16.msra.mxu1 %v2122_v62  ;;  %1869 = vmatprep.subr.bf16.mxu0 %v1868_v63  ;;  %v1206_v62 = vld [vmem:[%s4063_s3 + $0xa0] sm:$0xff]  ;;  %v1207_v63 = vld [vmem:[%s4063_s3 + $0xa8] sm:$0xff]  ;;  %v2176_v1 = vpack.c.bf16 %v1221_v60, %v1220_v11  ;;  %v556_v60 = vsub.s32 1, %v2533_v61 }
  0xf4   :  { %2125 = vmatprep.subr.bf16.mxu1 %v2124_v3  ;;  %v2148_v3 = vpack.c.bf16 %v1207_v63, %v1206_v62  ;;  %v1234_v11 = vld [vmem:[%s4063_s3 + $0x180] sm:$0xff]  ;;  %v564_v62 = vsub.s32 3, %v2533_v61 }
  0xf6   :  { %1871 = vmatpush1.bf16.msra.mxu0 %v1870_v8 }
  0xf7   :  { %2127 = vmatpush1.bf16.msra.mxu1 %v2126_v9  ;;  %1873 = vmatprep.subr.bf16.mxu0 %v1872_v10  ;;  %v1224_v9 = vld [vmem:[%s4063_s3 + $0x130] sm:$0xff]  ;;  %v2152_v10 = vpack.c.bf16 %v1209_v7, %v1208_v6 }
  0xf8   :  { %2129 = vmatprep.subr.bf16.mxu1 %v2128_v15  ;;  %v1210_v15 = vld [vmem:[%s4063_s3 + $0xc0] sm:$0xff]  ;;  %v2182_v18 = vpack.c.bf16 %v1225_v14, %v1224_v9  ;;  %v1387_v14 = vld [vmem:[%s4065_s5 + $0x8] sm:$0xff] }
  0xf9   :  { %v2156_v20 = vpack.c.bf16 %v1211_v16, %v1210_v15  ;;  %v1388_v16 = vld [vmem:[%s4065_s5 + $0x10] sm:$0xff] }
  0xfa   :  { %1875 = vmatpush1.bf16.msra.mxu0 %v1874_v21  ;;  %v1194_v21 = vld [vmem:[%s4063_s3 + $0x40] sm:$0xff] }
  0xfb   :  { %2131 = vmatpush1.bf16.msra.mxu1 %v2130_v23  ;;  %1877 = vmatprep.subr.bf16.mxu0 %v1876_v26  ;;  %v1195_v23 = vld [vmem:[%s4063_s3 + $0x48] sm:$0xff] }
  0xfc   :  { %2133 = vmatprep.subr.bf16.mxu1 %v2132_v30  ;;  %v1227_v26 = vld [vmem:[%s4063_s3 + $0x148] sm:$0xff]  ;;  %v2158_v29 = vpack.c.bf16 %v1195_v23, %v1194_v21  ;;  %v1561_v21 = vld [vmem:[%s4066_s4] ss:$0 sm:$0xff] }
  0xfd   :  { %v2185_v30 = vpack.c.bf16 %v1227_v26, %v1226_v19 }
  0xfe   :  { %1879 = vmatpush1.bf16.msra.mxu0 %v1878_v36  ;;  %v1214_v36 = vld [vmem:[%s4063_s3 + $0xe0] sm:$0xff] }
  0xff   :  { %2135 = vmatpush1.bf16.msra.mxu1 %v2134_v38  ;;  %1881 = vmatprep.subr.bf16.mxu0 %v1880_v39  ;;  %v1215_v38 = vld [vmem:[%s4063_s3 + $0xe8] sm:$0xff]  ;;  %v2162_v39 = vpack.c.bf16 %v1197_v34, %v1196_v33  ;;  %v1563_v33 = vld [vmem:[%s4069_s6] ss:$0 sm:$0xff] }
 0x100   :  { %2137 = vmatprep.subr.bf16.mxu1 %v2136_v42  ;;  %v2164_v22 = vpack.c.bf16 %v1215_v38, %v1214_v36  ;;  %v1231_v42 = vld [vmem:[%s4063_s3 + $0x168] sm:$0xff] }
 0x101   :  { %v2191_v43 = vpack.c.bf16 %v1231_v42, %v1230_v41 }
 0x102   :  { %1883 = vmatpush1.bf16.msra.mxu0 %v1882_v46  ;;  %v2166_v46 = vpack.c.bf16 %v1199_v45, %v1198_v44 }
 0x103   :  { %2139 = vmatpush1.bf16.msra.mxu1 %v2138_v47  ;;  %2141 = vmatprep.subr.bf16.mxu0 %v2140_v48  ;;  %v1232_v47 = vld [vmem:[%s4063_s3 + $0x170] sm:$0xff] }
 0x104   :  { %2172 = vmatprep.subr.bf16.mxu1 %v2228_v59  ;;  %v2194_v48 = vpack.c.bf16 %v1233_v25, %v1232_v47 }
 0x105   :  { %892 = vmatmul.mubr.f32.vlgmr.msra.gmra.mrb[0].mxu0 %v3504_v50 }
 0x106   :  { %1176 = vmatmul.mubr.f32.vlgmr.msra.gmra.mrb[0].mxu1 %v3504_v50  ;;  %2143 = vmatpush3.bf16.msra.mxu0 %v2142_v55  ;;  %v1223_v50 = vld [vmem:[%s4063_s3 + $0x128] sm:$0xff]  ;;  %v2170_v55 = vpack.c.bf16 %v1201_v54, %v1200_v53 }
 0x107   :  { %2174 = vmatpush1.bf16.msra.mxu1 %v2173_v56  ;;  %2145 = vmatprep.subr.bf16.mxu0 %v2144_v57  ;;  %v2179_v8 = vpack.c.bf16 %v1223_v50, %v1222_v2  ;;  %v2229_v56 = vmov 0.0   ;;  %v552_v57 = vsub.s32 0, %v2533_v61  ;;  %v565_v2 = vrot.slane %v548_v58, %v564_v62  ;;  %v1386_v61 = vld [vmem:[%s4065_s5] sm:$0xff] }
 0x108   :  { %2175 = vmatprep.subr.bf16.mxu1 %v2228_v59  ;;  %v2197_v15 = vpack.c.bf16 %v1387_v14, %v1386_v61 }
 0x109   :  { %v553_v63 = vrot.slane %v548_v58, %v552_v57 }
 0x10a   :  { %2147 = vmatpush3.bf16.msra.mxu0 %v2146_v0  ;;  %v561_v0 = vrot.slane %v548_v58, %v560_v24 }
 0x10b   :  { %2177 = vmatpush1.bf16.msra.mxu1 %v2176_v1  ;;  %2149 = vmatprep.subr.bf16.mxu0 %v2148_v3  ;;  %v557_v1 = vrot.slane %v548_v58, %v556_v60 }
 0x10c   :  { %2178 = vmatprep.subr.bf16.mxu1 %v2228_v59 }
 0x10e   :  { %2151 = vmatpush3.bf16.msra.mxu0 %v2150_v37 }
 0x10f   :  { %2180 = vmatpush1.bf16.msra.mxu1 %v2179_v8  ;;  %2153 = vmatprep.subr.bf16.mxu0 %v2152_v10 }
 0x110   :  { %2181 = vmatprep.subr.bf16.mxu1 %v2228_v59 }
 0x112   :  { %2155 = vmatpush3.bf16.msra.mxu0 %v2154_v17  ;;  %v1389_v17 = vld [vmem:[%s4065_s5 + $0x18] sm:$0xff] }
 0x113   :  { %2183 = vmatpush1.bf16.msra.mxu1 %v2182_v18  ;;  %2157 = vmatprep.subr.bf16.mxu0 %v2156_v20  ;;  %v2200_v18 = vpack.c.bf16 %v1389_v17, %v1388_v16 }
 0x114   :  { %2184 = vmatprep.subr.bf16.mxu1 %v2228_v59 }
 0x116   :  { %2159 = vmatpush3.bf16.msra.mxu0 %v2158_v29  ;;  %v1472_v29 = vld [vmem:[%s4067_s7] sm:$0xff] }
 0x117   :  { %2186 = vmatpush1.bf16.msra.mxu1 %v2185_v30  ;;  %2161 = vmatprep.subr.bf16.mxu0 %v2160_v32  ;;  %v1473_v30 = vld [vmem:[%s4067_s7 + $0x8] sm:$0xff]  ;;  %v14_v32 = vstv %s4068_s8 }
 0x118   :  { %2187 = vmatprep.subr.bf16.mxu1 %v2228_v59  ;;  %v2203_v31 = vpack.c.bf16 %v1473_v30, %v1472_v29  ;;  %15 = vst [vmem:[#allocation2] sm:$0x1] %v14_v32 }
 0x11a   :  { %2163 = vmatpush3.bf16.msra.mxu0 %v2162_v39 }
 0x11b   :  { %2189 = vmatpush1.bf16.msra.mxu1 %v2188_v40  ;;  %2165 = vmatprep.subr.bf16.mxu0 %v2164_v22 }
 0x11c   :  { %2190 = vmatprep.subr.bf16.mxu1 %v2228_v59 }
 0x11e   :  { %2167 = vmatpush3.bf16.msra.mxu0 %v2166_v46 }
 0x11f   :  { %2192 = vmatpush1.bf16.msra.mxu1 %v2191_v43  ;;  %2169 = vmatprep.subr.bf16.mxu0 %v2168_v52  ;;  %v1565_v39 = vld [vmem:[#allocation2] ss:$0 sm:$0xff] }
 0x120   :  { %2193 = vmatprep.subr.bf16.mxu1 %v2228_v59 }
 0x122   :  { %2171 = vmatpush3.bf16.msra.mxu0 %v2170_v55 }
 0x123   :  { %2195 = vmatpush1.bf16.msra.mxu1 %v2194_v48  ;;  %2196 = vmatprep.subr.bf16.mxu0 %v2228_v59 }
 0x124   :  { %1348 = vmatprep.subr.mxu1 %v2229_v56 }
 0x127   :  { %1349 = vmatpush1.msra.mxu1 %v1234_v11 }
 0x128   :  { %2202 = vmatprep.subr.bf16.mxu1 %v2228_v59 }
 0x1d8   :  { %v893_v3 = vpop.f32.mrb[0].mxu0 }
 0x1d9   :  { %v2205_v4 = vadd.f32 %v893_v3, %v553_v63  ;;  %v1177_v5 = vpop.f32.mrb[0].mxu1  ;;  %v895_v50 = vpop.f32.mrb[1].mxu0 }
 0x1da   :  { %v2207_v6 = vadd.f32 %v1177_v5, %v561_v0  ;;  %v2206_v7 = vadd.f32 %v895_v50, %v557_v1  ;;  %v1179_v37 = vpop.f32.mrb[1].mxu1 }
 0x1db   :  { %v2208_v8 = vadd.f32 %v1179_v37, %v565_v2  ;;  %v1182_v10 = vmax.f32 %v2205_v4, 0.0 }
 0x1dc   :  { %v1183_v9 = vmax.f32 %v2206_v7, 0.0  ;;  %v1184_v13 = vmax.f32 %v2207_v6, 0.0 }
 0x1dd   :  { %v1185_v12 = vmax.f32 %v2208_v8, 0.0 }
 0x1de   :  { %1310 = vmatprep.mubr.f32.mxu0 %v1183_v9 }
 0x1df   :  { %1562 = vmatprep.mubr.msk.f32.mxu1 %vm1242_vm0, %v1185_v12  ;;  %1311 = vmatmul.mubr.f32.vlgmr.msra.gmra.mrb[2].mxu0 %v1182_v10 }
 0x1e0   :  { %1381 = vmatmul.mubr.f32.vlgmr.msra.gmra.mrb[2].mxu1 %v1184_v13  ;;  %2198 = vmatpush3.bf16.msra.mxu0 %v2197_v15 }
 0x1e1   :  { %2199 = vmatprep.subr.bf16.mxu0 %v2228_v59  ;;  %1618 = vmatprep.mubr.msk.f32.mxu0 %vm2230_vm1, %v2229_v56 }
 0x1e2   :  { %1625 = vmatprep.mubr.msk.f32.mxu1 %vm2230_vm1, %v2229_v56  ;;  %2204 = vmatpush3.bf16.msra.mxu1 %v2203_v31 }
 0x1e4   :  { %2201 = vmatpush3.bf16.msra.mxu0 %v2200_v18 }
 0x2b2   :  { %v1599_v19 = vpop.f32.mrb[2].mxu0 }
 0x2b3   :  { %v1382_v20 = vpop.f32.mrb[2].mxu1  ;;  %v1600_v59 = vpop.f32.mrb[3].mxu0 }
 0x2b4   :  { %v1601_v23 = vadd.f32 %v1600_v59, %v1599_v19  ;;  %v1384_v26 = vpop.f32.mrb[3].mxu1 }
 0x2b6   :  { %v1313_v27 = vadd.f32 %v1601_v23, %v1561_v21 }
 0x2b8   :  { %v1383_v28 = vadd.f32 %v1382_v20, %v1313_v27 }
 0x2ba   :  { %1619 = vmatmul.mubr.msk.f32.vlgmr.msra.gmra.mrb[4].mxu0 %vm1397_vm2, %v1383_v28 }
 0x38d   :  { %v1467_v34 = vpop.f32.mrb[4].mxu0 }
 0x38e   :  { %v1468_v35 = vadd.f32 %v1563_v33, %v1467_v34  ;;  %v1620_v36 = vpop.f32.mrb[5].mxu0 }
 0x390   :  { %v1471_v38 = vmax.f32 %v1468_v35, 0.0 }
 0x392   :  { %1626 = vmatmul.mubr.msk.f32.vlgmr.msra.gmra.mrb[4].mxu1 %vm1481_vm3, %v1471_v38 }
 0x465   :  { %v1551_v40 = vpop.f32.mrb[4].mxu1 }
 0x466   :  { %v1552_v22 = vadd.f32 %v1565_v39, %v1551_v40  ;;  %v1627_v41 = vpop.f32.mrb[5].mxu1 }
 0x468   :  { %1556 = vst.msk [vmem:[%s4070_s9] sm:$0x3] %vm1555_vm4, %v1552_v22 }

</bundles_post_ra>
